<compile_context>
chip_gen: v6e
topology: v6e:2x2x1
jax: 0.10.0
libtpu: 0.0.40
codegen_flags: <defaults>
</compile_context>

<pallas_src>
import functools

import jax
import jax.numpy as jnp
from jax import lax
from jax.experimental import pallas as pl
from jax.experimental.pallas import tpu as pltpu


# ----------------------------------------------------------------------------- #
# helpers
# ----------------------------------------------------------------------------- #
def _pick_tile(dim, cap, align):
    """Largest multiple of `align` that evenly divides `dim` and is <= cap.

    Falls back to the full dimension (always legal for a BlockSpec) if no aligned
    divisor exists.  Caps keep per-kernel VMEM small enough to preserve 2-deep
    pipelining even on v7x's 64 MiB VMEM without touching vmem_limit_bytes.
    """
    t = (min(cap, dim) // align) * align
    while t >= align:
        if dim % t == 0:
            return t
        t -= align
    return dim


# ----------------------------------------------------------------------------- #
# kernel: tiled matmul + bias  (used for q / kv / proj Linear layers)
# ----------------------------------------------------------------------------- #
def _matmul_bias_kernel(x_ref, w_ref, b_ref, o_ref, acc_ref):
    @pl.when(pl.program_id(2) == 0)
    def _():
        acc_ref[...] = jnp.zeros(acc_ref.shape, jnp.float32)

    acc_ref[...] += jnp.dot(
        x_ref[...], w_ref[...], preferred_element_type=jnp.float32
    )

    @pl.when(pl.program_id(2) == pl.num_programs(2) - 1)
    def _():
        o_ref[...] = (acc_ref[...] + b_ref[...]).astype(o_ref.dtype)


def _linear(x, w, b, out_dtype=jnp.float32):
    """y = x @ w + b with x:(M,K) w:(K,N) b:(N,).  bf16 MXU operands, f32 accumulate."""
    M, K = x.shape
    N = w.shape[1]
    tm = _pick_tile(M, 256, 8)
    tk = _pick_tile(K, 512, 128)
    tn = _pick_tile(N, 256, 128)
    grid = (M // tm, N // tn, K // tk)
    return pl.pallas_call(
        _matmul_bias_kernel,
        out_shape=jax.ShapeDtypeStruct((M, N), out_dtype),
        grid_spec=pltpu.PrefetchScalarGridSpec(
            num_scalar_prefetch=0,
            grid=grid,
            in_specs=[
                pl.BlockSpec((tm, tk), lambda i, j, k: (i, k)),
                pl.BlockSpec((tk, tn), lambda i, j, k: (k, j)),
                pl.BlockSpec((1, tn), lambda i, j, k: (0, j)),
            ],
            out_specs=pl.BlockSpec((tm, tn), lambda i, j, k: (i, j)),
            scratch_shapes=[pltpu.VMEM((tm, tn), jnp.float32)],
        ),
        compiler_params=pltpu.CompilerParams(
            dimension_semantics=("parallel", "parallel", "arbitrary")
        ),
    )(x.astype(jnp.bfloat16), w.astype(jnp.bfloat16),
      b.reshape(1, N).astype(jnp.float32))


# ----------------------------------------------------------------------------- #
# kernel: fused matmul + bias + LayerNorm (sr-conv-as-matmul path)
# ----------------------------------------------------------------------------- #
def _matmul_bias_ln_kernel(x_ref, w_ref, b_ref, g_ref, beta_ref, o_ref, acc_ref,
                           *, eps):
    @pl.when(pl.program_id(2) == 0)
    def _():
        acc_ref[...] = jnp.zeros(acc_ref.shape, jnp.float32)

    acc_ref[...] += jnp.dot(
        x_ref[...], w_ref[...], preferred_element_type=jnp.float32
    )

    @pl.when(pl.program_id(2) == pl.num_programs(2) - 1)
    def _():
        y = acc_ref[...] + b_ref[...]                      # f32, full channel row
        mu = jnp.mean(y, axis=-1, keepdims=True)
        var = jnp.mean((y - mu) ** 2, axis=-1, keepdims=True)
        inv = lax.rsqrt(var + eps)
        o_ref[...] = ((y - mu) * inv * g_ref[...] + beta_ref[...]).astype(o_ref.dtype)


def _linear_bias_layernorm(x, w, b, gamma, beta, out_dtype=jnp.bfloat16, eps=1e-5):
    """(x @ w + b) followed by LayerNorm over the output channels, fused in-kernel.

    Avoids a full HBM round-trip of the spatially-reduced K/V tokens.
    The output tile spans the full channel dim (needed for the LN reduction).
    """
    M, K = x.shape
    N = w.shape[1]
    tm = _pick_tile(M, 256, 8)
    tk = _pick_tile(K, 512, 128)
    tn = N                                   # full row required for LayerNorm
    grid = (M // tm, 1, K // tk)
    kernel = functools.partial(_matmul_bias_ln_kernel, eps=eps)
    return pl.pallas_call(
        kernel,
        out_shape=jax.ShapeDtypeStruct((M, N), out_dtype),
        grid_spec=pltpu.PrefetchScalarGridSpec(
            num_scalar_prefetch=0,
            grid=grid,
            in_specs=[
                pl.BlockSpec((tm, tk), lambda i, j, k: (i, k)),
                pl.BlockSpec((tk, tn), lambda i, j, k: (k, j)),
                pl.BlockSpec((1, tn), lambda i, j, k: (0, j)),
                pl.BlockSpec((1, tn), lambda i, j, k: (0, j)),
                pl.BlockSpec((1, tn), lambda i, j, k: (0, j)),
            ],
            out_specs=pl.BlockSpec((tm, tn), lambda i, j, k: (i, j)),
            scratch_shapes=[pltpu.VMEM((tm, tn), jnp.float32)],
        ),
        compiler_params=pltpu.CompilerParams(
            dimension_semantics=("parallel", "parallel", "arbitrary")
        ),
    )(x.astype(jnp.bfloat16), w.astype(jnp.bfloat16),
      b.reshape(1, N).astype(jnp.float32),
      gamma.reshape(1, N).astype(jnp.float32),
      beta.reshape(1, N).astype(jnp.float32))


# ----------------------------------------------------------------------------- #
# kernel: flash attention (online softmax, KV reduction axis last)
# ----------------------------------------------------------------------------- #
def _flash_attn_kernel(q_ref, k_ref, v_ref, o_ref, m_sc, l_sc, acc_sc, *, scale):
    kv = pl.program_id(2)

    @pl.when(kv == 0)
    def _():
        m_sc[...] = jnp.full(m_sc.shape, -jnp.inf, jnp.float32)
        l_sc[...] = jnp.zeros(l_sc.shape, jnp.float32)
        acc_sc[...] = jnp.zeros(acc_sc.shape, jnp.float32)

    # Scores in f32 on the MXU; K kept with head_dim as the lane axis (no transpose).
    s = jnp.einsum(
        "bqd,bkd->bqk", q_ref[...], k_ref[...],
        preferred_element_type=jnp.float32,
    ) * scale

    m_new = jnp.maximum(m_sc[...], s.max(-1, keepdims=True))
    alpha = jnp.exp(m_sc[...] - m_new)
    p = jnp.exp(s - m_new)
    l_sc[...] = alpha * l_sc[...] + p.sum(-1, keepdims=True)
    acc_sc[...] = alpha * acc_sc[...] + jnp.einsum(
        "bqk,bkd->bqd", p.astype(v_ref.dtype), v_ref[...],
        preferred_element_type=jnp.float32,
    )
    m_sc[...] = m_new

    @pl.when(kv == pl.num_programs(2) - 1)
    def _():
        inv_l = pl.reciprocal(l_sc[...], approx=True)   # EUP, not VALU
        o_ref[...] = (acc_sc[...] * inv_l).astype(o_ref.dtype)


def _flash_attention(q, k, v, *, scale):
    """q:(BH,Nq,d)  k,v:(BH,Nk,d)  -> (BH,Nq,d) bf16.  Scores never hit HBM."""
    BH, Nq, d = q.shape
    Nk = k.shape[1]
    tq = _pick_tile(Nq, 256, 8)
    tk = _pick_tile(Nk, 256, 8)
    grid = (BH, Nq // tq, Nk // tk)
    kernel = functools.partial(_flash_attn_kernel, scale=scale)
    return pl.pallas_call(
        kernel,
        out_shape=jax.ShapeDtypeStruct((BH, Nq, d), jnp.bfloat16),
        grid_spec=pltpu.PrefetchScalarGridSpec(
            num_scalar_prefetch=0,
            grid=grid,
            in_specs=[
                pl.BlockSpec((1, tq, d), lambda b, qi, ki: (b, qi, 0)),
                pl.BlockSpec((1, tk, d), lambda b, qi, ki: (b, ki, 0)),
                pl.BlockSpec((1, tk, d), lambda b, qi, ki: (b, ki, 0)),
            ],
            # Constant in ki -> output is a resident accumulator across the KV axis.
            out_specs=pl.BlockSpec((1, tq, d), lambda b, qi, ki: (b, qi, 0)),
            scratch_shapes=[
                pltpu.VMEM((1, tq, 1), jnp.float32),   # running max m
                pltpu.VMEM((1, tq, 1), jnp.float32),   # running sum l
                pltpu.VMEM((1, tq, d), jnp.float32),   # f32 output accumulator
            ],
        ),
        compiler_params=pltpu.CompilerParams(
            dimension_semantics=("parallel", "parallel", "arbitrary")
        ),
    )(q.astype(jnp.bfloat16), k.astype(jnp.bfloat16), v.astype(jnp.bfloat16))


# ----------------------------------------------------------------------------- #
# full PVT Attention forward
# ----------------------------------------------------------------------------- #
def pvt_attention_forward(params, x, *, H, W, head, sr_ratio):
    B, N, C = x.shape
    d = C // head
    scale = float(d) ** -0.5

    # ---- Q projection ----
    wq = params["wq"].T                                   # torch (out,in) -> (in,out)
    q = _linear(x.reshape(B * N, C), wq, params["bq"], out_dtype=jnp.bfloat16)
    q = q.reshape(B, N, head, d).transpose(0, 2, 1, 3).reshape(B * head, N, d)

    # ---- spatial reduction of K/V tokens (Conv2d stride==kernel -> patch matmul) ----
    if sr_ratio > 1:
        sr = sr_ratio
        Hr, Wr = H // sr, W // sr
        Nk = Hr * Wr
        patches = x.reshape(B, Hr, sr, Wr, sr, C)
        patches = patches.transpose(0, 1, 3, 2, 4, 5).reshape(B * Nk, sr * sr * C)
        # torch conv weight (out_ch, in_ch, kh, kw) -> (kh, kw, in_ch, out_ch) -> matmul
        w_sr = params["w_sr"].transpose(2, 3, 1, 0).reshape(sr * sr * C, C)
        x_kv = _linear_bias_layernorm(
            patches, w_sr, params["b_sr"], params["ln_g"], params["ln_b"],
            out_dtype=jnp.bfloat16,
        )
    else:
        Nk = N
        x_kv = x.reshape(B * N, C)

    # ---- fused K/V projection ----
    wkv = params["wkv"].T
    kv = _linear(x_kv, wkv, params["bkv"], out_dtype=jnp.bfloat16)
    kv = kv.reshape(B, Nk, 2, head, d).transpose(2, 0, 3, 1, 4)   # (2,B,head,Nk,d)
    k = kv[0].reshape(B * head, Nk, d)
    v = kv[1].reshape(B * head, Nk, d)

    # ---- flash attention ----
    o = _flash_attention(q, k, v, scale=scale)                    # (B*head, N, d)
    # TODO(synk): for production head_dim=64, fold heads into one lane-dense (tq, C)
    # output slab inside the kernel instead of per-head (tq, d) stores.
    o = o.reshape(B, head, N, d).transpose(0, 2, 1, 3).reshape(B * N, C)

    # ---- output projection ----
    wproj = params["wproj"].T
    out = _linear(o, wproj, params["bproj"], out_dtype=jnp.float32)
    return out.reshape(B, N, C)


# ----------------------------------------------------------------------------- #
# main
# ----------------------------------------------------------------------------- #
if __name__ == "__main__":
    key = jax.random.PRNGKey(0)
    B, C, H, W = 2, 32, 8, 8
    head, sr_ratio = 2, 2
    N = H * W

    ks = jax.random.split(key, 10)
    x = jax.random.normal(ks[0], (B, N, C), jnp.float32)

    params = {
        # PyTorch Linear layout (out_features, in_features)
        "wq": 0.1 * jax.random.normal(ks[1], (C, C), jnp.float32),
        "bq": 0.1 * jax.random.normal(ks[2], (C,), jnp.float32),
        "wkv": 0.1 * jax.random.normal(ks[3], (2 * C, C), jnp.float32),
        "bkv": 0.1 * jax.random.normal(ks[4], (2 * C,), jnp.float32),
        "wproj": 0.1 * jax.random.normal(ks[5], (C, C), jnp.float32),
        "bproj": 0.1 * jax.random.normal(ks[6], (C,), jnp.float32),
        # PyTorch Conv2d layout (out_ch, in_ch, kh, kw)
        "w_sr": 0.1 * jax.random.normal(ks[7], (C, C, sr_ratio, sr_ratio), jnp.float32),
        "b_sr": 0.1 * jax.random.normal(ks[8], (C,), jnp.float32),
        "ln_g": jnp.ones((C,), jnp.float32),
        "ln_b": jnp.zeros((C,), jnp.float32),
    }

    # sr_ratio > 1 path (conv spatial reduction + LayerNorm)
    fwd = jax.jit(functools.partial(
        pvt_attention_forward, H=H, W=W, head=head, sr_ratio=sr_ratio))
    out = fwd(params, x)
    jax.block_until_ready(out)
    assert out.shape == (B, N, C)

    # sr_ratio == 1 path (no spatial reduction)
    fwd1 = jax.jit(functools.partial(
        pvt_attention_forward, H=H, W=W, head=head, sr_ratio=1))
    out1 = fwd1(params, x)
    jax.block_until_ready(out1)
    assert out1.shape == (B, N, C)

    print("KERNEL_OK")
</pallas_src>

<mosaic_0001>
module attributes {stable_mosaic.version = 11 : i64} {
  func.func @_matmul_bias_kernel(%arg0: i32, %arg1: i32, %arg2: i32, %arg3: memref<32x32xbf16, #tpu.memory_space<vmem>>, %arg4: memref<32x64xbf16, #tpu.memory_space<vmem>>, %arg5: memref<1x64xf32, #tpu.memory_space<vmem>>, %arg6: memref<32x64xbf16, #tpu.memory_space<vmem>>, %arg7: memref<32x64xf32, #tpu.memory_space<vmem>>) attributes {dimension_semantics = [#tpu.dimension_semantics<parallel>, #tpu.dimension_semantics<parallel>, #tpu.dimension_semantics<arbitrary>], iteration_bounds = array<i64: 1, 1, 1>, scalar_prefetch = 0 : i64, scratch_operands = 1 : i64, tpu.core_type = #tpu.core_type<tc>, window_params = [{transform_indices = @transform_0, window_bounds = array<i64: 32, 32>}, {transform_indices = @transform_1, window_bounds = array<i64: 32, 64>}, {transform_indices = @transform_2, window_bounds = array<i64: 1, 64>}, {transform_indices = @transform_3, window_bounds = array<i64: 32, 64>}]} {
    %c0_i32 = arith.constant 0 : i32
    %0 = arith.cmpi eq, %arg2, %c0_i32 : i32
    %1 = arith.extui %0 : i1 to i32
    %c0_i32_0 = arith.constant 0 : i32
    %2 = arith.cmpi ne, %1, %c0_i32_0 : i32
    scf.if %2 {
      %cst_10 = arith.constant 0.000000e+00 : f32
      %12 = vector.broadcast %cst_10 : f32 to vector<32x64xf32>
      %c0_11 = arith.constant 0 : index
      %c0_12 = arith.constant 0 : index
      %13 = vector.load %arg7[%c0_11, %c0_12] : memref<32x64xf32, #tpu.memory_space<vmem>>, vector<32x64xf32>
      tpu.vector_store %arg7[%c0_11, %c0_12], %12 {strides = array<i32>} : memref<32x64xf32, #tpu.memory_space<vmem>>, vector<32x64xf32>,
    } else {
    }
    %c0 = arith.constant 0 : index
    %c0_1 = arith.constant 0 : index
    %3 = vector.load %arg7[%c0, %c0_1] : memref<32x64xf32, #tpu.memory_space<vmem>>, vector<32x64xf32>
    %c0_2 = arith.constant 0 : index
    %c0_3 = arith.constant 0 : index
    %4 = vector.load %arg3[%c0_2, %c0_3] : memref<32x32xbf16, #tpu.memory_space<vmem>>, vector<32x32xbf16>
    %c0_4 = arith.constant 0 : index
    %c0_5 = arith.constant 0 : index
    %5 = vector.load %arg4[%c0_4, %c0_5] : memref<32x64xbf16, #tpu.memory_space<vmem>>, vector<32x64xbf16>
    %cst = arith.constant dense<0.000000e+00> : vector<32x64xf32>
    %6 = tpu.matmul %4, %5, %cst {dimension_numbers = #tpu.dot_dimension_numbers<[1], [0], [0], [1], [0, 0, 1, 1], [], []>} : vector<32x32xbf16>, vector<32x64xbf16>, vector<32x64xf32> -> vector<32x64xf32>
    %7 = arith.addf %3, %6 : vector<32x64xf32>
    %c0_6 = arith.constant 0 : index
    %c0_7 = arith.constant 0 : index
    %8 = vector.load %arg7[%c0_6, %c0_7] : memref<32x64xf32, #tpu.memory_space<vmem>>, vector<32x64xf32>
    tpu.vector_store %arg7[%c0_6, %c0_7], %7 {strides = array<i32>} : memref<32x64xf32, #tpu.memory_space<vmem>>, vector<32x64xf32>,
    %c0_i32_8 = arith.constant 0 : i32
    %9 = arith.cmpi eq, %arg2, %c0_i32_8 : i32
    %10 = arith.extui %9 : i1 to i32
    %c0_i32_9 = arith.constant 0 : i32
    %11 = arith.cmpi ne, %10, %c0_i32_9 : i32
    scf.if %11 {
      %c0_10 = arith.constant 0 : index
      %c0_11 = arith.constant 0 : index
      %12 = vector.load %arg7[%c0_10, %c0_11] : memref<32x64xf32, #tpu.memory_space<vmem>>, vector<32x64xf32>
      %c0_12 = arith.constant 0 : index
      %c0_13 = arith.constant 0 : index
      %13 = vector.load %arg5[%c0_12, %c0_13] : memref<1x64xf32, #tpu.memory_space<vmem>>, vector<1x64xf32>
      %14 = vector.broadcast %13 : vector<1x64xf32> to vector<32x64xf32>
      %15 = arith.addf %12, %14 : vector<32x64xf32>
      %16 = arith.truncf %15 : vector<32x64xf32> to vector<32x64xbf16>
      %c0_14 = arith.constant 0 : index
      %c0_15 = arith.constant 0 : index
      %17 = vector.load %arg6[%c0_14, %c0_15] : memref<32x64xbf16, #tpu.memory_space<vmem>>, vector<32x64xbf16>
      tpu.vector_store %arg6[%c0_14, %c0_15], %16 {strides = array<i32>} : memref<32x64xbf16, #tpu.memory_space<vmem>>, vector<32x64xbf16>,
    } else {
    }
    return
  }
  func.func @transform_0(%arg0: i32, %arg1: i32, %arg2: i32) -> (i32, i32) {
    %c0_i32 = arith.constant 0 : i32
    return %arg0, %arg2 : i32, i32
  }
  func.func @transform_1(%arg0: i32, %arg1: i32, %arg2: i32) -> (i32, i32) {
    %c0_i32 = arith.constant 0 : i32
    return %arg2, %arg1 : i32, i32
  }
  func.func @transform_2(%arg0: i32, %arg1: i32, %arg2: i32) -> (i32, i32) {
    %c0_i32 = arith.constant 0 : i32
    %c0_i32_0 = arith.constant 0 : i32
    return %c0_i32, %arg1 : i32, i32
  }
  func.func @transform_3(%arg0: i32, %arg1: i32, %arg2: i32) -> (i32, i32) {
    %c0_i32 = arith.constant 0 : i32
    return %arg0, %arg1 : i32, i32
  }
}

module attributes {stable_mosaic.version = 11 : i64} {
  func.func @_matmul_bias_ln_kernel(%arg0: i32, %arg1: i32, %arg2: i32, %arg3: memref<32x128xbf16, #tpu.memory_space<vmem>>, %arg4: memref<128x32xbf16, #tpu.memory_space<vmem>>, %arg5: memref<1x32xf32, #tpu.memory_space<vmem>>, %arg6: memref<1x32xf32, #tpu.memory_space<vmem>>, %arg7: memref<1x32xf32, #tpu.memory_space<vmem>>, %arg8: memref<32x32xbf16, #tpu.memory_space<vmem>>, %arg9: memref<32x32xf32, #tpu.memory_space<vmem>>) attributes {dimension_semantics = [#tpu.dimension_semantics<parallel>, #tpu.dimension_semantics<parallel>, #tpu.dimension_semantics<arbitrary>], iteration_bounds = array<i64: 1, 1, 1>, scalar_prefetch = 0 : i64, scratch_operands = 1 : i64, tpu.core_type = #tpu.core_type<tc>, window_params = [{transform_indices = @transform_0, window_bounds = array<i64: 32, 128>}, {transform_indices = @transform_1, window_bounds = array<i64: 128, 32>}, {transform_indices = @transform_2, window_bounds = array<i64: 1, 32>}, {transform_indices = @transform_3, window_bounds = array<i64: 1, 32>}, {transform_indices = @transform_4, window_bounds = array<i64: 1, 32>}, {transform_indices = @transform_5, window_bounds = array<i64: 32, 32>}]} {
    %c0_i32 = arith.constant 0 : i32
    %0 = arith.cmpi eq, %arg2, %c0_i32 : i32
    %1 = arith.extui %0 : i1 to i32
    %c0_i32_0 = arith.constant 0 : i32
    %2 = arith.cmpi ne, %1, %c0_i32_0 : i32
    scf.if %2 {
      %cst_10 = arith.constant 0.000000e+00 : f32
      %12 = vector.broadcast %cst_10 : f32 to vector<32x32xf32>
      %c0_11 = arith.constant 0 : index
      %c0_12 = arith.constant 0 : index
      %13 = vector.load %arg9[%c0_11, %c0_12] : memref<32x32xf32, #tpu.memory_space<vmem>>, vector<32x32xf32>
      tpu.vector_store %arg9[%c0_11, %c0_12], %12 {strides = array<i32>} : memref<32x32xf32, #tpu.memory_space<vmem>>, vector<32x32xf32>,
    } else {
    }
    %c0 = arith.constant 0 : index
    %c0_1 = arith.constant 0 : index
    %3 = vector.load %arg9[%c0, %c0_1] : memref<32x32xf32, #tpu.memory_space<vmem>>, vector<32x32xf32>
    %c0_2 = arith.constant 0 : index
    %c0_3 = arith.constant 0 : index
    %4 = vector.load %arg3[%c0_2, %c0_3] : memref<32x128xbf16, #tpu.memory_space<vmem>>, vector<32x128xbf16>
    %c0_4 = arith.constant 0 : index
    %c0_5 = arith.constant 0 : index
    %5 = vector.load %arg4[%c0_4, %c0_5] : memref<128x32xbf16, #tpu.memory_space<vmem>>, vector<128x32xbf16>
    %cst = arith.constant dense<0.000000e+00> : vector<32x32xf32>
    %6 = tpu.matmul %4, %5, %cst {dimension_numbers = #tpu.dot_dimension_numbers<[1], [0], [0], [1], [0, 0, 1, 1], [], []>} : vector<32x128xbf16>, vector<128x32xbf16>, vector<32x32xf32> -> vector<32x32xf32>
    %7 = arith.addf %3, %6 : vector<32x32xf32>
    %c0_6 = arith.constant 0 : index
    %c0_7 = arith.constant 0 : index
    %8 = vector.load %arg9[%c0_6, %c0_7] : memref<32x32xf32, #tpu.memory_space<vmem>>, vector<32x32xf32>
    tpu.vector_store %arg9[%c0_6, %c0_7], %7 {strides = array<i32>} : memref<32x32xf32, #tpu.memory_space<vmem>>, vector<32x32xf32>,
    %c0_i32_8 = arith.constant 0 : i32
    %9 = arith.cmpi eq, %arg2, %c0_i32_8 : i32
    %10 = arith.extui %9 : i1 to i32
    %c0_i32_9 = arith.constant 0 : i32
    %11 = arith.cmpi ne, %10, %c0_i32_9 : i32
    scf.if %11 {
      %c0_10 = arith.constant 0 : index
      %c0_11 = arith.constant 0 : index
      %12 = vector.load %arg9[%c0_10, %c0_11] : memref<32x32xf32, #tpu.memory_space<vmem>>, vector<32x32xf32>
      %c0_12 = arith.constant 0 : index
      %c0_13 = arith.constant 0 : index
      %13 = vector.load %arg5[%c0_12, %c0_13] : memref<1x32xf32, #tpu.memory_space<vmem>>, vector<1x32xf32>
      %14 = vector.broadcast %13 : vector<1x32xf32> to vector<32x32xf32>
      %15 = arith.addf %12, %14 : vector<32x32xf32>
      %cst_14 = arith.constant dense<0.000000e+00> : vector<32xf32>
      %16 = vector.multi_reduction <add>, %15, %cst_14 [1] : vector<32x32xf32> to vector<32xf32>
      %17 = vector.shape_cast %16 : vector<32xf32> to vector<32x1xf32>
      %cst_15 = arith.constant 3.200000e+01 : f32
      %18 = vector.broadcast %cst_15 : f32 to vector<32x1xf32>
      %19 = arith.divf %17, %18 : vector<32x1xf32>
      %20 = vector.broadcast %19 : vector<32x1xf32> to vector<32x32xf32>
      %21 = arith.subf %15, %20 : vector<32x32xf32>
      %22 = arith.mulf %21, %21 : vector<32x32xf32>
      %cst_16 = arith.constant dense<0.000000e+00> : vector<32xf32>
      %23 = vector.multi_reduction <add>, %22, %cst_16 [1] : vector<32x32xf32> to vector<32xf32>
      %24 = vector.shape_cast %23 : vector<32xf32> to vector<32x1xf32>
      %cst_17 = arith.constant 3.200000e+01 : f32
      %25 = vector.broadcast %cst_17 : f32 to vector<32x1xf32>
      %26 = arith.divf %24, %25 : vector<32x1xf32>
      %cst_18 = arith.constant 9.99999974E-6 : f32
      %27 = vector.broadcast %cst_18 : f32 to vector<32x1xf32>
      %28 = arith.addf %26, %27 : vector<32x1xf32>
      %29 = math.rsqrt %28 : vector<32x1xf32>
      %30 = vector.broadcast %19 : vector<32x1xf32> to vector<32x32xf32>
      %31 = arith.subf %15, %30 : vector<32x32xf32>
      %32 = vector.broadcast %29 : vector<32x1xf32> to vector<32x32xf32>
      %33 = arith.mulf %31, %32 : vector<32x32xf32>
      %c0_19 = arith.constant 0 : index
      %c0_20 = arith.constant 0 : index
      %34 = vector.load %arg6[%c0_19, %c0_20] : memref<1x32xf32, #tpu.memory_space<vmem>>, vector<1x32xf32>
      %35 = vector.broadcast %34 : vector<1x32xf32> to vector<32x32xf32>
      %36 = arith.mulf %33, %35 : vector<32x32xf32>
      %c0_21 = arith.constant 0 : index
      %c0_22 = arith.constant 0 : index
      %37 = vector.load %arg7[%c0_21, %c0_22] : memref<1x32xf32, #tpu.memory_space<vmem>>, vector<1x32xf32>
      %38 = vector.broadcast %37 : vector<1x32xf32> to vector<32x32xf32>
      %39 = arith.addf %36, %38 : vector<32x32xf32>
      %40 = arith.truncf %39 : vector<32x32xf32> to vector<32x32xbf16>
      %c0_23 = arith.constant 0 : index
      %c0_24 = arith.constant 0 : index
      %41 = vector.load %arg8[%c0_23, %c0_24] : memref<32x32xbf16, #tpu.memory_space<vmem>>, vector<32x32xbf16>
      tpu.vector_store %arg8[%c0_23, %c0_24], %40 {strides = array<i32>} : memref<32x32xbf16, #tpu.memory_space<vmem>>, vector<32x32xbf16>,
    } else {
    }
    return
  }
  func.func @transform_0(%arg0: i32, %arg1: i32, %arg2: i32) -> (i32, i32) {
    %c0_i32 = arith.constant 0 : i32
    return %arg0, %arg2 : i32, i32
  }
  func.func @transform_1(%arg0: i32, %arg1: i32, %arg2: i32) -> (i32, i32) {
    %c0_i32 = arith.constant 0 : i32
    return %arg2, %arg1 : i32, i32
  }
  func.func @transform_2(%arg0: i32, %arg1: i32, %arg2: i32) -> (i32, i32) {
    %c0_i32 = arith.constant 0 : i32
    %c0_i32_0 = arith.constant 0 : i32
    return %c0_i32, %arg1 : i32, i32
  }
  func.func @transform_3(%arg0: i32, %arg1: i32, %arg2: i32) -> (i32, i32) {
    %c0_i32 = arith.constant 0 : i32
    %c0_i32_0 = arith.constant 0 : i32
    return %c0_i32, %arg1 : i32, i32
  }
  func.func @transform_4(%arg0: i32, %arg1: i32, %arg2: i32) -> (i32, i32) {
    %c0_i32 = arith.constant 0 : i32
    %c0_i32_0 = arith.constant 0 : i32
    return %c0_i32, %arg1 : i32, i32
  }
  func.func @transform_5(%arg0: i32, %arg1: i32, %arg2: i32) -> (i32, i32) {
    %c0_i32 = arith.constant 0 : i32
    return %arg0, %arg1 : i32, i32
  }
}

module attributes {stable_mosaic.version = 11 : i64} {
  func.func @_matmul_bias_kernel(%arg0: i32, %arg1: i32, %arg2: i32, %arg3: memref<128x32xbf16, #tpu.memory_space<vmem>>, %arg4: memref<32x32xbf16, #tpu.memory_space<vmem>>, %arg5: memref<1x32xf32, #tpu.memory_space<vmem>>, %arg6: memref<128x32xbf16, #tpu.memory_space<vmem>>, %arg7: memref<128x32xf32, #tpu.memory_space<vmem>>) attributes {dimension_semantics = [#tpu.dimension_semantics<parallel>, #tpu.dimension_semantics<parallel>, #tpu.dimension_semantics<arbitrary>], iteration_bounds = array<i64: 1, 1, 1>, scalar_prefetch = 0 : i64, scratch_operands = 1 : i64, tpu.core_type = #tpu.core_type<tc>, window_params = [{transform_indices = @transform_0, window_bounds = array<i64: 128, 32>}, {transform_indices = @transform_1, window_bounds = array<i64: 32, 32>}, {transform_indices = @transform_2, window_bounds = array<i64: 1, 32>}, {transform_indices = @transform_3, window_bounds = array<i64: 128, 32>}]} {
    %c0_i32 = arith.constant 0 : i32
    %0 = arith.cmpi eq, %arg2, %c0_i32 : i32
    %1 = arith.extui %0 : i1 to i32
    %c0_i32_0 = arith.constant 0 : i32
    %2 = arith.cmpi ne, %1, %c0_i32_0 : i32
    scf.if %2 {
      %cst_10 = arith.constant 0.000000e+00 : f32
      %12 = vector.broadcast %cst_10 : f32 to vector<128x32xf32>
      %c0_11 = arith.constant 0 : index
      %c0_12 = arith.constant 0 : index
      %13 = vector.load %arg7[%c0_11, %c0_12] : memref<128x32xf32, #tpu.memory_space<vmem>>, vector<128x32xf32>
      tpu.vector_store %arg7[%c0_11, %c0_12], %12 {strides = array<i32>} : memref<128x32xf32, #tpu.memory_space<vmem>>, vector<128x32xf32>,
    } else {
    }
    %c0 = arith.constant 0 : index
    %c0_1 = arith.constant 0 : index
    %3 = vector.load %arg7[%c0, %c0_1] : memref<128x32xf32, #tpu.memory_space<vmem>>, vector<128x32xf32>
    %c0_2 = arith.constant 0 : index
    %c0_3 = arith.constant 0 : index
    %4 = vector.load %arg3[%c0_2, %c0_3] : memref<128x32xbf16, #tpu.memory_space<vmem>>, vector<128x32xbf16>
    %c0_4 = arith.constant 0 : index
    %c0_5 = arith.constant 0 : index
    %5 = vector.load %arg4[%c0_4, %c0_5] : memref<32x32xbf16, #tpu.memory_space<vmem>>, vector<32x32xbf16>
    %cst = arith.constant dense<0.000000e+00> : vector<128x32xf32>
    %6 = tpu.matmul %4, %5, %cst {dimension_numbers = #tpu.dot_dimension_numbers<[1], [0], [0], [1], [0, 0, 1, 1], [], []>} : vector<128x32xbf16>, vector<32x32xbf16>, vector<128x32xf32> -> vector<128x32xf32>
    %7 = arith.addf %3, %6 : vector<128x32xf32>
    %c0_6 = arith.constant 0 : index
    %c0_7 = arith.constant 0 : index
    %8 = vector.load %arg7[%c0_6, %c0_7] : memref<128x32xf32, #tpu.memory_space<vmem>>, vector<128x32xf32>
    tpu.vector_store %arg7[%c0_6, %c0_7], %7 {strides = array<i32>} : memref<128x32xf32, #tpu.memory_space<vmem>>, vector<128x32xf32>,
    %c0_i32_8 = arith.constant 0 : i32
    %9 = arith.cmpi eq, %arg2, %c0_i32_8 : i32
    %10 = arith.extui %9 : i1 to i32
    %c0_i32_9 = arith.constant 0 : i32
    %11 = arith.cmpi ne, %10, %c0_i32_9 : i32
    scf.if %11 {
      %c0_10 = arith.constant 0 : index
      %c0_11 = arith.constant 0 : index
      %12 = vector.load %arg7[%c0_10, %c0_11] : memref<128x32xf32, #tpu.memory_space<vmem>>, vector<128x32xf32>
      %c0_12 = arith.constant 0 : index
      %c0_13 = arith.constant 0 : index
      %13 = vector.load %arg5[%c0_12, %c0_13] : memref<1x32xf32, #tpu.memory_space<vmem>>, vector<1x32xf32>
      %14 = vector.broadcast %13 : vector<1x32xf32> to vector<128x32xf32>
      %15 = arith.addf %12, %14 : vector<128x32xf32>
      %16 = arith.truncf %15 : vector<128x32xf32> to vector<128x32xbf16>
      %c0_14 = arith.constant 0 : index
      %c0_15 = arith.constant 0 : index
      %17 = vector.load %arg6[%c0_14, %c0_15] : memref<128x32xbf16, #tpu.memory_space<vmem>>, vector<128x32xbf16>
      tpu.vector_store %arg6[%c0_14, %c0_15], %16 {strides = array<i32>} : memref<128x32xbf16, #tpu.memory_space<vmem>>, vector<128x32xbf16>,
    } else {
    }
    return
  }
  func.func @transform_0(%arg0: i32, %arg1: i32, %arg2: i32) -> (i32, i32) {
    %c0_i32 = arith.constant 0 : i32
    return %arg0, %arg2 : i32, i32
  }
  func.func @transform_1(%arg0: i32, %arg1: i32, %arg2: i32) -> (i32, i32) {
    %c0_i32 = arith.constant 0 : i32
    return %arg2, %arg1 : i32, i32
  }
  func.func @transform_2(%arg0: i32, %arg1: i32, %arg2: i32) -> (i32, i32) {
    %c0_i32 = arith.constant 0 : i32
    %c0_i32_0 = arith.constant 0 : i32
    return %c0_i32, %arg1 : i32, i32
  }
  func.func @transform_3(%arg0: i32, %arg1: i32, %arg2: i32) -> (i32, i32) {
    %c0_i32 = arith.constant 0 : i32
    return %arg0, %arg1 : i32, i32
  }
}

module attributes {stable_mosaic.version = 11 : i64} {
  func.func @_flash_attn_kernel(%arg0: i32, %arg1: i32, %arg2: i32, %arg3: memref<1x64x16xbf16, #tpu.memory_space<vmem>>, %arg4: memref<1x16x16xbf16, #tpu.memory_space<vmem>>, %arg5: memref<1x16x16xbf16, #tpu.memory_space<vmem>>, %arg6: memref<1x64x16xbf16, #tpu.memory_space<vmem>>, %arg7: memref<1x64x1xf32, #tpu.memory_space<vmem>>, %arg8: memref<1x64x1xf32, #tpu.memory_space<vmem>>, %arg9: memref<1x64x16xf32, #tpu.memory_space<vmem>>) attributes {dimension_semantics = [#tpu.dimension_semantics<parallel>, #tpu.dimension_semantics<parallel>, #tpu.dimension_semantics<arbitrary>], iteration_bounds = array<i64: 4, 1, 1>, scalar_prefetch = 0 : i64, scratch_operands = 3 : i64, tpu.core_type = #tpu.core_type<tc>, window_params = [{transform_indices = @transform_0, window_bounds = array<i64: 1, 64, 16>}, {transform_indices = @transform_1, window_bounds = array<i64: 1, 16, 16>}, {transform_indices = @transform_2, window_bounds = array<i64: 1, 16, 16>}, {transform_indices = @transform_3, window_bounds = array<i64: 1, 64, 16>}]} {
    %c0_i32 = arith.constant 0 : i32
    %0 = arith.cmpi eq, %arg2, %c0_i32 : i32
    %1 = arith.extui %0 : i1 to i32
    %c0_i32_0 = arith.constant 0 : i32
    %2 = arith.cmpi ne, %1, %c0_i32_0 : i32
    scf.if %2 {
      %cst_36 = arith.constant 0xFF800000 : f32
      %36 = vector.broadcast %cst_36 : f32 to vector<1x64x1xf32>
      %c0_37 = arith.constant 0 : index
      %c0_38 = arith.constant 0 : index
      %c0_39 = arith.constant 0 : index
      %37 = vector.load %arg7[%c0_37, %c0_38, %c0_39] : memref<1x64x1xf32, #tpu.memory_space<vmem>>, vector<1x64x1xf32>
      tpu.vector_store %arg7[%c0_37, %c0_38, %c0_39], %36 {strides = array<i32>} : memref<1x64x1xf32, #tpu.memory_space<vmem>>, vector<1x64x1xf32>,
      %cst_40 = arith.constant 0.000000e+00 : f32
      %38 = vector.broadcast %cst_40 : f32 to vector<1x64x1xf32>
      %c0_41 = arith.constant 0 : index
      %c0_42 = arith.constant 0 : index
      %c0_43 = arith.constant 0 : index
      %39 = vector.load %arg8[%c0_41, %c0_42, %c0_43] : memref<1x64x1xf32, #tpu.memory_space<vmem>>, vector<1x64x1xf32>
      tpu.vector_store %arg8[%c0_41, %c0_42, %c0_43], %38 {strides = array<i32>} : memref<1x64x1xf32, #tpu.memory_space<vmem>>, vector<1x64x1xf32>,
      %cst_44 = arith.constant 0.000000e+00 : f32
      %40 = vector.broadcast %cst_44 : f32 to vector<1x64x16xf32>
      %c0_45 = arith.constant 0 : index
      %c0_46 = arith.constant 0 : index
      %c0_47 = arith.constant 0 : index
      %41 = vector.load %arg9[%c0_45, %c0_46, %c0_47] : memref<1x64x16xf32, #tpu.memory_space<vmem>>, vector<1x64x16xf32>
      tpu.vector_store %arg9[%c0_45, %c0_46, %c0_47], %40 {strides = array<i32>} : memref<1x64x16xf32, #tpu.memory_space<vmem>>, vector<1x64x16xf32>,
    } else {
    }
    %c0 = arith.constant 0 : index
    %c0_1 = arith.constant 0 : index
    %c0_2 = arith.constant 0 : index
    %3 = vector.load %arg3[%c0, %c0_1, %c0_2] : memref<1x64x16xbf16, #tpu.memory_space<vmem>>, vector<1x64x16xbf16>
    %c0_3 = arith.constant 0 : index
    %c0_4 = arith.constant 0 : index
    %c0_5 = arith.constant 0 : index
    %4 = vector.load %arg4[%c0_3, %c0_4, %c0_5] : memref<1x16x16xbf16, #tpu.memory_space<vmem>>, vector<1x16x16xbf16>
    "tpu.trace_start"() <{level = 10 : i32, message = "bqd,bkd->bqk"}> : () -> ()
    %cst = arith.constant dense<0.000000e+00> : vector<1x64x16xf32>
    %5 = tpu.matmul %3, %4, %cst {dimension_numbers = #tpu.dot_dimension_numbers<[2], [2], [1], [1], [0, 0, 0, 1, 1, 1], [0], [0]>} : vector<1x64x16xbf16>, vector<1x16x16xbf16>, vector<1x64x16xf32> -> vector<1x64x16xf32>
    "tpu.trace_stop"() : () -> ()
    %cst_6 = arith.constant 2.500000e-01 : f32
    %6 = vector.broadcast %cst_6 : f32 to vector<1x64x16xf32>
    %7 = arith.mulf %5, %6 : vector<1x64x16xf32>
    %c0_7 = arith.constant 0 : index
    %c0_8 = arith.constant 0 : index
    %c0_9 = arith.constant 0 : index
    %8 = vector.load %arg7[%c0_7, %c0_8, %c0_9] : memref<1x64x1xf32, #tpu.memory_space<vmem>>, vector<1x64x1xf32>
    %cst_10 = arith.constant dense<0xFF800000> : vector<1x64xf32>
    %9 = vector.multi_reduction <maximumf>, %7, %cst_10 [2] : vector<1x64x16xf32> to vector<1x64xf32>
    %10 = vector.shape_cast %9 : vector<1x64xf32> to vector<1x64x1xf32>
    %11 = arith.maximumf %8, %10 : vector<1x64x1xf32>
    %c0_11 = arith.constant 0 : index
    %c0_12 = arith.constant 0 : index
    %c0_13 = arith.constant 0 : index
    %12 = vector.load %arg7[%c0_11, %c0_12, %c0_13] : memref<1x64x1xf32, #tpu.memory_space<vmem>>, vector<1x64x1xf32>
    %13 = arith.subf %12, %11 : vector<1x64x1xf32>
    %14 = math.exp %13 : vector<1x64x1xf32>
    %15 = vector.broadcast %11 : vector<1x64x1xf32> to vector<1x64x16xf32>
    %16 = arith.subf %7, %15 : vector<1x64x16xf32>
    %17 = math.exp %16 : vector<1x64x16xf32>
    %c0_14 = arith.constant 0 : index
    %c0_15 = arith.constant 0 : index
    %c0_16 = arith.constant 0 : index
    %18 = vector.load %arg8[%c0_14, %c0_15, %c0_16] : memref<1x64x1xf32, #tpu.memory_space<vmem>>, vector<1x64x1xf32>
    %19 = arith.mulf %14, %18 : vector<1x64x1xf32>
    %cst_17 = arith.constant dense<0.000000e+00> : vector<1x64xf32>
    %20 = vector.multi_reduction <add>, %17, %cst_17 [2] : vector<1x64x16xf32> to vector<1x64xf32>
    %21 = vector.shape_cast %20 : vector<1x64xf32> to vector<1x64x1xf32>
    %22 = arith.addf %19, %21 : vector<1x64x1xf32>
    %c0_18 = arith.constant 0 : index
    %c0_19 = arith.constant 0 : index
    %c0_20 = arith.constant 0 : index
    %23 = vector.load %arg8[%c0_18, %c0_19, %c0_20] : memref<1x64x1xf32, #tpu.memory_space<vmem>>, vector<1x64x1xf32>
    tpu.vector_store %arg8[%c0_18, %c0_19, %c0_20], %22 {strides = array<i32>} : memref<1x64x1xf32, #tpu.memory_space<vmem>>, vector<1x64x1xf32>,
    %c0_21 = arith.constant 0 : index
    %c0_22 = arith.constant 0 : index
    %c0_23 = arith.constant 0 : index
    %24 = vector.load %arg9[%c0_21, %c0_22, %c0_23] : memref<1x64x16xf32, #tpu.memory_space<vmem>>, vector<1x64x16xf32>
    %25 = vector.broadcast %14 : vector<1x64x1xf32> to vector<1x64x16xf32>
    %26 = arith.mulf %25, %24 : vector<1x64x16xf32>
    %27 = arith.truncf %17 : vector<1x64x16xf32> to vector<1x64x16xbf16>
    %c0_24 = arith.constant 0 : index
    %c0_25 = arith.constant 0 : index
    %c0_26 = arith.constant 0 : index
    %28 = vector.load %arg5[%c0_24, %c0_25, %c0_26] : memref<1x16x16xbf16, #tpu.memory_space<vmem>>, vector<1x16x16xbf16>
    "tpu.trace_start"() <{level = 10 : i32, message = "bqk,bkd->bqd"}> : () -> ()
    %cst_27 = arith.constant dense<0.000000e+00> : vector<1x64x16xf32>
    %29 = tpu.matmul %27, %28, %cst_27 {dimension_numbers = #tpu.dot_dimension_numbers<[2], [1], [1], [2], [0, 0, 0, 1, 1, 2], [0], [0]>} : vector<1x64x16xbf16>, vector<1x16x16xbf16>, vector<1x64x16xf32> -> vector<1x64x16xf32>
    "tpu.trace_stop"() : () -> ()
    %30 = arith.addf %26, %29 : vector<1x64x16xf32>
    %c0_28 = arith.constant 0 : index
    %c0_29 = arith.constant 0 : index
    %c0_30 = arith.constant 0 : index
    %31 = vector.load %arg9[%c0_28, %c0_29, %c0_30] : memref<1x64x16xf32, #tpu.memory_space<vmem>>, vector<1x64x16xf32>
    tpu.vector_store %arg9[%c0_28, %c0_29, %c0_30], %30 {strides = array<i32>} : memref<1x64x16xf32, #tpu.memory_space<vmem>>, vector<1x64x16xf32>,
    %c0_31 = arith.constant 0 : index
    %c0_32 = arith.constant 0 : index
    %c0_33 = arith.constant 0 : index
    %32 = vector.load %arg7[%c0_31, %c0_32, %c0_33] : memref<1x64x1xf32, #tpu.memory_space<vmem>>, vector<1x64x1xf32>
    tpu.vector_store %arg7[%c0_31, %c0_32, %c0_33], %11 {strides = array<i32>} : memref<1x64x1xf32, #tpu.memory_space<vmem>>, vector<1x64x1xf32>,
    %c0_i32_34 = arith.constant 0 : i32
    %33 = arith.cmpi eq, %arg2, %c0_i32_34 : i32
    %34 = arith.extui %33 : i1 to i32
    %c0_i32_35 = arith.constant 0 : i32
    %35 = arith.cmpi ne, %34, %c0_i32_35 : i32
    scf.if %35 {
      %c0_36 = arith.constant 0 : index
      %c0_37 = arith.constant 0 : index
      %c0_38 = arith.constant 0 : index
      %36 = vector.load %arg8[%c0_36, %c0_37, %c0_38] : memref<1x64x1xf32, #tpu.memory_space<vmem>>, vector<1x64x1xf32>
      %37 = tpu.reciprocal %36 {approx = true} : vector<1x64x1xf32> -> vector<1x64x1xf32>
      %c0_39 = arith.constant 0 : index
      %c0_40 = arith.constant 0 : index
      %c0_41 = arith.constant 0 : index
      %38 = vector.load %arg9[%c0_39, %c0_40, %c0_41] : memref<1x64x16xf32, #tpu.memory_space<vmem>>, vector<1x64x16xf32>
      %39 = vector.broadcast %37 : vector<1x64x1xf32> to vector<1x64x16xf32>
      %40 = arith.mulf %38, %39 : vector<1x64x16xf32>
      %41 = arith.truncf %40 : vector<1x64x16xf32> to vector<1x64x16xbf16>
      %c0_42 = arith.constant 0 : index
      %c0_43 = arith.constant 0 : index
      %c0_44 = arith.constant 0 : index
      %42 = vector.load %arg6[%c0_42, %c0_43, %c0_44] : memref<1x64x16xbf16, #tpu.memory_space<vmem>>, vector<1x64x16xbf16>
      tpu.vector_store %arg6[%c0_42, %c0_43, %c0_44], %41 {strides = array<i32>} : memref<1x64x16xbf16, #tpu.memory_space<vmem>>, vector<1x64x16xbf16>,
    } else {
    }
    return
  }
  func.func @transform_0(%arg0: i32, %arg1: i32, %arg2: i32) -> (i32, i32, i32) {
    %c0_i32 = arith.constant 0 : i32
    %c0_i32_0 = arith.constant 0 : i32
    return %arg0, %arg1, %c0_i32 : i32, i32, i32
  }
  func.func @transform_1(%arg0: i32, %arg1: i32, %arg2: i32) -> (i32, i32, i32) {
    %c0_i32 = arith.constant 0 : i32
    %c0_i32_0 = arith.constant 0 : i32
    return %arg0, %arg2, %c0_i32 : i32, i32, i32
  }
  func.func @transform_2(%arg0: i32, %arg1: i32, %arg2: i32) -> (i32, i32, i32) {
    %c0_i32 = arith.constant 0 : i32
    %c0_i32_0 = arith.constant 0 : i32
    return %arg0, %arg2, %c0_i32 : i32, i32, i32
  }
  func.func @transform_3(%arg0: i32, %arg1: i32, %arg2: i32) -> (i32, i32, i32) {
    %c0_i32 = arith.constant 0 : i32
    %c0_i32_0 = arith.constant 0 : i32
    return %arg0, %arg1, %c0_i32 : i32, i32, i32
  }
}

module attributes {stable_mosaic.version = 11 : i64} {
  func.func @_matmul_bias_kernel(%arg0: i32, %arg1: i32, %arg2: i32, %arg3: memref<128x32xbf16, #tpu.memory_space<vmem>>, %arg4: memref<32x32xbf16, #tpu.memory_space<vmem>>, %arg5: memref<1x32xf32, #tpu.memory_space<vmem>>, %arg6: memref<128x32xf32, #tpu.memory_space<vmem>>, %arg7: memref<128x32xf32, #tpu.memory_space<vmem>>) attributes {dimension_semantics = [#tpu.dimension_semantics<parallel>, #tpu.dimension_semantics<parallel>, #tpu.dimension_semantics<arbitrary>], iteration_bounds = array<i64: 1, 1, 1>, scalar_prefetch = 0 : i64, scratch_operands = 1 : i64, tpu.core_type = #tpu.core_type<tc>, window_params = [{transform_indices = @transform_0, window_bounds = array<i64: 128, 32>}, {transform_indices = @transform_1, window_bounds = array<i64: 32, 32>}, {transform_indices = @transform_2, window_bounds = array<i64: 1, 32>}, {transform_indices = @transform_3, window_bounds = array<i64: 128, 32>}]} {
    %c0_i32 = arith.constant 0 : i32
    %0 = arith.cmpi eq, %arg2, %c0_i32 : i32
    %1 = arith.extui %0 : i1 to i32
    %c0_i32_0 = arith.constant 0 : i32
    %2 = arith.cmpi ne, %1, %c0_i32_0 : i32
    scf.if %2 {
      %cst_10 = arith.constant 0.000000e+00 : f32
      %12 = vector.broadcast %cst_10 : f32 to vector<128x32xf32>
      %c0_11 = arith.constant 0 : index
      %c0_12 = arith.constant 0 : index
      %13 = vector.load %arg7[%c0_11, %c0_12] : memref<128x32xf32, #tpu.memory_space<vmem>>, vector<128x32xf32>
      tpu.vector_store %arg7[%c0_11, %c0_12], %12 {strides = array<i32>} : memref<128x32xf32, #tpu.memory_space<vmem>>, vector<128x32xf32>,
    } else {
    }
    %c0 = arith.constant 0 : index
    %c0_1 = arith.constant 0 : index
    %3 = vector.load %arg7[%c0, %c0_1] : memref<128x32xf32, #tpu.memory_space<vmem>>, vector<128x32xf32>
    %c0_2 = arith.constant 0 : index
    %c0_3 = arith.constant 0 : index
    %4 = vector.load %arg3[%c0_2, %c0_3] : memref<128x32xbf16, #tpu.memory_space<vmem>>, vector<128x32xbf16>
    %c0_4 = arith.constant 0 : index
    %c0_5 = arith.constant 0 : index
    %5 = vector.load %arg4[%c0_4, %c0_5] : memref<32x32xbf16, #tpu.memory_space<vmem>>, vector<32x32xbf16>
    %cst = arith.constant dense<0.000000e+00> : vector<128x32xf32>
    %6 = tpu.matmul %4, %5, %cst {dimension_numbers = #tpu.dot_dimension_numbers<[1], [0], [0], [1], [0, 0, 1, 1], [], []>} : vector<128x32xbf16>, vector<32x32xbf16>, vector<128x32xf32> -> vector<128x32xf32>
    %7 = arith.addf %3, %6 : vector<128x32xf32>
    %c0_6 = arith.constant 0 : index
    %c0_7 = arith.constant 0 : index
    %8 = vector.load %arg7[%c0_6, %c0_7] : memref<128x32xf32, #tpu.memory_space<vmem>>, vector<128x32xf32>
    tpu.vector_store %arg7[%c0_6, %c0_7], %7 {strides = array<i32>} : memref<128x32xf32, #tpu.memory_space<vmem>>, vector<128x32xf32>,
    %c0_i32_8 = arith.constant 0 : i32
    %9 = arith.cmpi eq, %arg2, %c0_i32_8 : i32
    %10 = arith.extui %9 : i1 to i32
    %c0_i32_9 = arith.constant 0 : i32
    %11 = arith.cmpi ne, %10, %c0_i32_9 : i32
    scf.if %11 {
      %c0_10 = arith.constant 0 : index
      %c0_11 = arith.constant 0 : index
      %12 = vector.load %arg7[%c0_10, %c0_11] : memref<128x32xf32, #tpu.memory_space<vmem>>, vector<128x32xf32>
      %c0_12 = arith.constant 0 : index
      %c0_13 = arith.constant 0 : index
      %13 = vector.load %arg5[%c0_12, %c0_13] : memref<1x32xf32, #tpu.memory_space<vmem>>, vector<1x32xf32>
      %14 = vector.broadcast %13 : vector<1x32xf32> to vector<128x32xf32>
      %15 = arith.addf %12, %14 : vector<128x32xf32>
      %c0_14 = arith.constant 0 : index
      %c0_15 = arith.constant 0 : index
      %16 = vector.load %arg6[%c0_14, %c0_15] : memref<128x32xf32, #tpu.memory_space<vmem>>, vector<128x32xf32>
      tpu.vector_store %arg6[%c0_14, %c0_15], %15 {strides = array<i32>} : memref<128x32xf32, #tpu.memory_space<vmem>>, vector<128x32xf32>,
    } else {
    }
    return
  }
  func.func @transform_0(%arg0: i32, %arg1: i32, %arg2: i32) -> (i32, i32) {
    %c0_i32 = arith.constant 0 : i32
    return %arg0, %arg2 : i32, i32
  }
  func.func @transform_1(%arg0: i32, %arg1: i32, %arg2: i32) -> (i32, i32) {
    %c0_i32 = arith.constant 0 : i32
    return %arg2, %arg1 : i32, i32
  }
  func.func @transform_2(%arg0: i32, %arg1: i32, %arg2: i32) -> (i32, i32) {
    %c0_i32 = arith.constant 0 : i32
    %c0_i32_0 = arith.constant 0 : i32
    return %c0_i32, %arg1 : i32, i32
  }
  func.func @transform_3(%arg0: i32, %arg1: i32, %arg2: i32) -> (i32, i32) {
    %c0_i32 = arith.constant 0 : i32
    return %arg0, %arg1 : i32, i32
  }
}

</mosaic_0001>

<bundles_post_ra>
// kernel: pvt_attention_forward.7
= control target key start
LH: loop header
LB: loop body
LE: loop exit
PB: predicated region body
PF: predicated region fallthrough
CT: control target
= control target key end

     0   :  { %vm19_vm0 = vcmask 523264   ;;  %v198_v1 = vmov 0.0   ;;  %vm58_vm1 = vcmask 261120   ;;  %vm157_vm2 = vcmask 519168   ;;  %s254_s1 = inlined_call_operand.vmem [shape: bf16[32,64], index: 1, kind: input, shape index: {}]   ;;  %s255_s0 = inlined_call_operand.vmem [shape: bf16[32,32], index: 0, kind: input, shape index: {}]   ;;  %s256_s2 = inlined_call_operand.vmem [shape: f32[1,64], index: 2, kind: input, shape index: {}]   ;;  %s257_s3 = inlined_call_operand.vmem [shape: bf16[32,64], index: 3, kind: output, shape index: {}]  }
   0x1   :  { %v194_v0 = vld [vmem:[%s254_s1 + $0x8] sm:$0xff]   ;;  %22 = vst.msk [vmem:[#allocation2 + $0x10] sm:$0xff] %vm19_vm0, %v198_v1  ;;  %20 = vst.msk [vmem:[#allocation2] sm:$0xff] %vm19_vm0, %v198_v1  ;;  %v195_v2 = vld [vmem:[%s254_s1] sm:$0xff]  }
   0x2   :  { %21 = vst.msk [vmem:[#allocation2 + $0x8] sm:$0xff] %vm19_vm0, %v198_v1  ;;  %23 = vst.msk [vmem:[#allocation2 + $0x18] sm:$0xff] %vm19_vm0, %v198_v1  ;;  %185 = vmatprep.subr.bf16.mxu0 %v194_v0  ;;  %v196_v3 = vld [vmem:[%s255_s0] sm:$0xff]   ;;  %v197_v4 = vld [vmem:[%s255_s0 + $0x8] sm:$0xff]  }
   0x3   :  { %186 = vmatpush3.bf16.msra.mxu0 %v194_v0  ;;  %189 = vmatprep.mubr.msk.bf16.mxu0 %vm58_vm1, %v196_v3  ;;  %v172_v17 = vld [vmem:[%s256_s2] ss:$0 sm:$0xff] }
   0x4   :  { %187 = vmatprep.subr.bf16.mxu0 %v195_v2 }
   0x7   :  { %188 = vmatpush3.bf16.msra.mxu0 %v195_v2 }
   0x8   :  { %v26_v5 = vld [vmem:[#allocation2 + $0x10] sm:$0xff]  ;;  %v24_v7 = vld [vmem:[#allocation2] sm:$0xff] }
   0x9   :  { %v27_v10 = vld [vmem:[#allocation2 + $0x18] sm:$0xff]  ;;  %v25_v13 = vld [vmem:[#allocation2 + $0x8] sm:$0xff] }
   0xa   :  { %190 = vmatmul.mubr.msk.bf16.vlgmr.msra.gmra.mxu0 %vm58_vm1, %v197_v4 }
  0xca   :  { %v191_v6 = vpop.f32.mrf.mxu0 }
  0xcb   :  { %v116_v8 = vadd.f32 %v191_v6, %v26_v5 }
  0xcc   :  { %v99_v9 = vpop.f32.mrf.mxu0 }
  0xcd   :  { %121 = vst.msk [vmem:[#allocation2 + $0x10] sm:$0xff] %vm19_vm0, %v116_v8  ;;  %v114_v11 = vadd.f32 %v99_v9, %v24_v7 }
  0xce   :  { %v192_v12 = vpop.f32.mrf.mxu0 }
  0xcf   :  { %119 = vst.msk [vmem:[#allocation2] sm:$0xff] %vm19_vm0, %v114_v11  ;;  %v117_v14 = vadd.f32 %v192_v12, %v27_v10 }
  0xd0   :  { %v102_v15 = vpop.f32.mrf.mxu0 }
  0xd1   :  { %122 = vst.msk [vmem:[#allocation2 + $0x18] sm:$0xff] %vm19_vm0, %v117_v14  ;;  %v115_v16 = vadd.f32 %v102_v15, %v25_v13 }
  0xd3   :  { %120 = vst.msk [vmem:[#allocation2 + $0x8] sm:$0xff] %vm19_vm0, %v115_v16 }
  0xd4   :  { %v128_v18 = vld [vmem:[#allocation2 + $0x10] sm:$0xff] }
  0xd5   :  { %v139_v19 = vadd.f32 %v172_v17, %v128_v18 }
  0xd6   :  { %v126_v20 = vld [vmem:[#allocation2] sm:$0xff] }
  0xd7   :  { %v179_v21 = vpack.c.bf16 %v139_v19, %v139_v19  ;;  %v137_v22 = vadd.f32 %v172_v17, %v126_v20 }
  0xd8   :  { %v129_v23 = vld [vmem:[#allocation2 + $0x18] sm:$0xff] }
  0xd9   :  { %160 = vst.msk [vmem:[%s257_s3 + $0x8] sm:$0xf] %vm157_vm2, %v179_v21  ;;  %v177_v24 = vpack.c.bf16 %v137_v22, %v137_v22  ;;  %v140_v25 = vadd.f32 %v172_v17, %v129_v23 }
  0xda   :  { %v127_v26 = vld [vmem:[#allocation2 + $0x8] sm:$0xff] }
  0xdb   :  { %158 = vst.msk [vmem:[%s257_s3] sm:$0xf] %vm157_vm2, %v177_v24  ;;  %v180_v27 = vpack.c.bf16 %v140_v25, %v140_v25  ;;  %v138_v28 = vadd.f32 %v172_v17, %v127_v26 }
  0xdd   :  { %161 = vst.msk [vmem:[%s257_s3 + $0xc] sm:$0xf] %vm157_vm2, %v180_v27  ;;  %v178_v29 = vpack.c.bf16 %v138_v28, %v138_v28 }
  0xdf   :  { %159 = vst.msk [vmem:[%s257_s3 + $0x4] sm:$0xf] %vm157_vm2, %v178_v29 }

// kernel: pvt_attention_forward.6
= control target key start
LH: loop header
LB: loop body
LE: loop exit
PB: predicated region body
PF: predicated region fallthrough
CT: control target
= control target key end

     0   :  { %vm25_vm0 = vcmask 261120   ;;  %v360_v1 = vmov 0.0   ;;  %vm281_vm1 = vcmask 257024   ;;  %s462_s1 = inlined_call_operand.vmem [shape: bf16[128,32], index: 1, kind: input, shape index: {}]   ;;  %s463_s0 = inlined_call_operand.vmem [shape: bf16[32,128], index: 0, kind: input, shape index: {}]   ;;  %s464_s2 = inlined_call_operand.vmem [shape: f32[1,32], index: 2, kind: input, shape index: {}]   ;;  %s465_s3 = inlined_call_operand.vmem [shape: f32[1,32], index: 3, kind: input, shape index: {}]   ;;  %s466_s4 = inlined_call_operand.vmem [shape: f32[1,32], index: 4, kind: input, shape index: {}]   ;;  %s467_s5 = inlined_call_operand.vmem [shape: bf16[32,32], index: 5, kind: output, shape index: {}]  }
   0x1   :  { %v342_v0 = vld [vmem:[%s462_s1 + $0x38] sm:$0xff]   ;;  %28 = vst.msk [vmem:[#allocation2 + $0x10] sm:$0xff] %vm25_vm0, %v360_v1  ;;  %26 = vst.msk [vmem:[#allocation2] sm:$0xff] %vm25_vm0, %v360_v1  ;;  %v343_v2 = vld [vmem:[%s462_s1 + $0x30] sm:$0xff]  }
   0x2   :  { %27 = vst.msk [vmem:[#allocation2 + $0x8] sm:$0xff] %vm25_vm0, %v360_v1  ;;  %29 = vst.msk [vmem:[#allocation2 + $0x18] sm:$0xff] %vm25_vm0, %v360_v1  ;;  %321 = vmatprep.subr.bf16.mxu0 %v342_v0  ;;  %v344_v3 = vld [vmem:[%s462_s1 + $0x28] sm:$0xff]   ;;  %v345_v4 = vld [vmem:[%s462_s1 + $0x20] sm:$0xff]  }
   0x3   :  { %322 = vmatpush3.bf16.msra.mxu0 %v342_v0  ;;  %v350_v5 = vld [vmem:[%s463_s0] sm:$0xff]   ;;  %v346_v6 = vld [vmem:[%s462_s1 + $0x18] sm:$0xff]   ;;  %v347_v7 = vld [vmem:[%s462_s1 + $0x10] sm:$0xff]  }
   0x4   :  { %323 = vmatprep.subr.bf16.mxu0 %v343_v2  ;;  %337 = vmatprep.mubr.bf16.mxu0 %v350_v5  ;;  %v348_v8 = vld [vmem:[%s462_s1 + $0x8] sm:$0xff]   ;;  %v349_v9 = vld [vmem:[%s462_s1] sm:$0xff]  }
   0x5   :  { %v351_v10 = vld [vmem:[%s463_s0 + $0x8] sm:$0xff]   ;;  %v300_v23 = vld [vmem:[%s464_s2] ss:$0 sm:$0xff] }
   0x6   :  { %v301_v5 = vld [vmem:[%s465_s3] ss:$0 sm:$0xff] }
   0x7   :  { %324 = vmatpush3.bf16.msra.mxu0 %v343_v2 }
   0x8   :  { %325 = vmatprep.subr.bf16.mxu0 %v344_v3  ;;  %v32_v11 = vld [vmem:[#allocation2 + $0x10] sm:$0xff]  ;;  %v30_v13 = vld [vmem:[#allocation2] sm:$0xff] }
   0x9   :  { %v33_v16 = vld [vmem:[#allocation2 + $0x18] sm:$0xff]  ;;  %v31_v19 = vld [vmem:[#allocation2 + $0x8] sm:$0xff] }
   0xb   :  { %326 = vmatpush3.bf16.msra.mxu0 %v344_v3 }
   0xc   :  { %327 = vmatprep.subr.bf16.mxu0 %v345_v4 }
   0xf   :  { %328 = vmatpush3.bf16.msra.mxu0 %v345_v4 }
  0x10   :  { %329 = vmatprep.subr.bf16.mxu0 %v346_v6 }
  0x13   :  { %330 = vmatpush3.bf16.msra.mxu0 %v346_v6 }
  0x14   :  { %331 = vmatprep.subr.bf16.mxu0 %v347_v7 }
  0x17   :  { %332 = vmatpush3.bf16.msra.mxu0 %v347_v7  ;;  %v302_v7 = vld [vmem:[%s466_s4] ss:$0 sm:$0xff] }
  0x18   :  { %333 = vmatprep.subr.bf16.mxu0 %v348_v8 }
  0x1b   :  { %334 = vmatpush3.bf16.msra.mxu0 %v348_v8 }
  0x1c   :  { %335 = vmatprep.subr.bf16.mxu0 %v349_v9 }
  0x1f   :  { %336 = vmatpush3.bf16.msra.mxu0 %v349_v9 }
  0x22   :  { %338 = vmatmul.mubr.bf16.vlgmr.msra.gmra.mxu0 %v351_v10 }
  0xe2   :  { %v339_v12 = vpop.f32.mrf.mxu0 }
  0xe3   :  { %v165_v14 = vadd.f32 %v339_v12, %v32_v11 }
  0xe4   :  { %v148_v15 = vpop.f32.mrf.mxu0 }
  0xe5   :  { %170 = vst.msk [vmem:[#allocation2 + $0x10] sm:$0xff] %vm25_vm0, %v165_v14  ;;  %v163_v17 = vadd.f32 %v148_v15, %v30_v13 }
  0xe6   :  { %v340_v18 = vpop.f32.mrf.mxu0 }
  0xe7   :  { %168 = vst.msk [vmem:[#allocation2] sm:$0xff] %vm25_vm0, %v163_v17  ;;  %v166_v20 = vadd.f32 %v340_v18, %v33_v16 }
  0xe8   :  { %v151_v21 = vpop.f32.mrf.mxu0 }
  0xe9   :  { %171 = vst.msk [vmem:[#allocation2 + $0x18] sm:$0xff] %vm25_vm0, %v166_v20  ;;  %v164_v22 = vadd.f32 %v151_v21, %v31_v19 }
  0xeb   :  { %169 = vst.msk [vmem:[#allocation2 + $0x8] sm:$0xff] %vm25_vm0, %v164_v22 }
  0xec   :  { %v177_v24 = vld [vmem:[#allocation2 + $0x10] sm:$0xff] }
  0xed   :  { %v188_v25 = vadd.f32 %v300_v23, %v177_v24 }
  0xee   :  { %v175_v26 = vld [vmem:[#allocation2] sm:$0xff] }
  0xef   :  { %v196_v27 = vsel %vm25_vm0, %v188_v25, 0.0  ;;  %v186_v28 = vadd.f32 %v300_v23, %v175_v26 }
  0xf0   :  { %197 = vadd.xlane.f32.xlu1 %v196_v27  ;;  %v178_v29 = vld [vmem:[#allocation2 + $0x18] sm:$0xff] }
  0xf1   :  { %v190_v30 = vsel %vm25_vm0, %v186_v28, 0.0  ;;  %v189_v31 = vadd.f32 %v300_v23, %v178_v29 }
  0xf2   :  { %191 = vadd.xlane.f32.xlu0 %v190_v30  ;;  %v176_v32 = vld [vmem:[#allocation2 + $0x8] sm:$0xff] }
  0xf3   :  { %v199_v33 = vsel %vm25_vm0, %v189_v31, 0.0  ;;  %v187_v34 = vadd.f32 %v300_v23, %v176_v32 }
  0xf4   :  { %200 = vadd.xlane.f32.xlu1 %v199_v33 }
  0xf5   :  { %v193_v35 = vsel %vm25_vm0, %v187_v34, 0.0 }
  0xf6   :  { %194 = vadd.xlane.f32.xlu0 %v193_v35 }
 0x179   :  { %v198_v36 = vpop.xlane.xlu1 %197 }
 0x17a   :  { %v205_v37 = vmul.f32 0.03125, %v198_v36 }
 0x17b   :  { %v192_v38 = vpop.xlane.xlu0 %191 }
 0x17c   :  { %v203_v39 = vmul.f32 0.03125, %v192_v38  ;;  %v209_v41 = vsub.f32 %v188_v25, %v205_v37 }
 0x17d   :  { %v201_v40 = vpop.xlane.xlu1 %200 }
 0x17e   :  { %v207_v42 = vsub.f32 %v186_v28, %v203_v39  ;;  %v206_v43 = vmul.f32 0.03125, %v201_v40  ;;  %v213_v50 = vmul.f32 %v209_v41, %v209_v41 }
 0x17f   :  { %v195_v44 = vpop.xlane.xlu0 %194 }
 0x180   :  { %v204_v45 = vmul.f32 0.03125, %v195_v44  ;;  %v211_v46 = vmul.f32 %v207_v42, %v207_v42  ;;  %v210_v47 = vsub.f32 %v189_v31, %v206_v43  ;;  %v221_v52 = vsel %vm25_vm0, %v213_v50, 0.0 }
 0x182   :  { %v208_v48 = vsub.f32 %v187_v34, %v204_v45  ;;  %v215_v49 = vsel %vm25_vm0, %v211_v46, 0.0  ;;  %v214_v54 = vmul.f32 %v210_v47, %v210_v47 }
 0x183   :  { %216 = vadd.xlane.f32.xlu0 %v215_v49 }
 0x184   :  { %v212_v51 = vmul.f32 %v208_v48, %v208_v48  ;;  %v224_v55 = vsel %vm25_vm0, %v214_v54, 0.0 }
 0x186   :  { %v218_v53 = vsel %vm25_vm0, %v212_v51, 0.0 }
 0x187   :  { %222 = vadd.xlane.f32.xlu0 %v221_v52  ;;  %219 = vadd.xlane.f32.xlu1 %v218_v53 }
 0x18b   :  { %225 = vadd.xlane.f32.xlu1 %v224_v55 }
 0x20c   :  { %v217_v56 = vpop.xlane.xlu0 %216 }
 0x20d   :  { %v227_v57 = vmul.f32 0.03125, %v217_v56 }
 0x20f   :  { %v231_v58 = vadd.f32 1e-05, %v227_v57 }
 0x210   :  { %v220_v59 = vpop.xlane.xlu1 %219  ;;  %v223_v60 = vpop.xlane.xlu0 %222 }
 0x211   :  { %352 = vrsqrt.f32 %v231_v58  ;;  %v228_v61 = vmul.f32 0.03125, %v220_v59  ;;  %v229_v62 = vmul.f32 0.03125, %v223_v60 }
 0x213   :  { %v232_v63 = vadd.f32 1e-05, %v228_v61  ;;  %v233_v0 = vadd.f32 1e-05, %v229_v62 }
 0x214   :  { %v226_v1 = vpop.xlane.xlu1 %225 }
 0x215   :  { %354 = vrsqrt.f32 %v232_v63  ;;  %v230_v2 = vmul.f32 0.03125, %v226_v1 }
 0x216   :  { %356 = vrsqrt.f32 %v233_v0 }
 0x217   :  { %v234_v3 = vadd.f32 1e-05, %v230_v2 }
 0x219   :  { %358 = vrsqrt.f32 %v234_v3 }
 0x21e   :  { %v353_v4 = vpop.eup %352 }
 0x21f   :  { %v239_v6 = vmul.f32 %v353_v4, %v207_v42 }
 0x221   :  { %v250_v8 = vmul.f32 %v301_v5, %v239_v6 }
 0x222   :  { %v355_v9 = vpop.eup %354 }
 0x223   :  { %v357_v10 = vpop.eup %356  ;;  %v261_v11 = vadd.f32 %v302_v7, %v250_v8  ;;  %v240_v12 = vmul.f32 %v355_v9, %v208_v48 }
 0x224   :  { %v241_v13 = vmul.f32 %v357_v10, %v209_v41 }
 0x225   :  { %v307_v14 = vpack.c.bf16 %v261_v11, %v261_v11  ;;  %v251_v15 = vmul.f32 %v301_v5, %v240_v12 }
 0x226   :  { %v359_v16 = vpop.eup %358  ;;  %v252_v17 = vmul.f32 %v301_v5, %v241_v13 }
 0x227   :  { %282 = vst.msk [vmem:[%s467_s5] sm:$0xf] %vm281_vm1, %v307_v14  ;;  %v262_v18 = vadd.f32 %v302_v7, %v251_v15  ;;  %v242_v19 = vmul.f32 %v359_v16, %v210_v47 }
 0x228   :  { %v263_v20 = vadd.f32 %v302_v7, %v252_v17 }
 0x229   :  { %v308_v21 = vpack.c.bf16 %v262_v18, %v262_v18  ;;  %v253_v22 = vmul.f32 %v301_v5, %v242_v19 }
 0x22a   :  { %v309_v23 = vpack.c.bf16 %v263_v20, %v263_v20 }
 0x22b   :  { %283 = vst.msk [vmem:[%s467_s5 + $0x4] sm:$0xf] %vm281_vm1, %v308_v21  ;;  %v264_v24 = vadd.f32 %v302_v7, %v253_v22 }
 0x22c   :  { %284 = vst.msk [vmem:[%s467_s5 + $0x8] sm:$0xf] %vm281_vm1, %v309_v23 }
 0x22d   :  { %v310_v25 = vpack.c.bf16 %v264_v24, %v264_v24 }
 0x22f   :  { %285 = vst.msk [vmem:[%s467_s5 + $0xc] sm:$0xf] %vm281_vm1, %v310_v25 }

// kernel: pvt_attention_forward.5
= control target key start
LH: loop header
LB: loop body
LE: loop exit
PB: predicated region body
PF: predicated region fallthrough
CT: control target
= control target key end

     0   :  { %vm19_vm0 = vcmask 261120   ;;  %v501_v1 = vmov 0.0   ;;  %vm384_vm1 = vcmask 257024   ;;  %s677_s1 = inlined_call_operand.vmem [shape: bf16[32,32], index: 1, kind: input, shape index: {}]   ;;  %s678_s0 = inlined_call_operand.vmem [shape: bf16[128,32], index: 0, kind: input, shape index: {}]   ;;  %s679_s2 = inlined_call_operand.vmem [shape: f32[1,32], index: 2, kind: input, shape index: {}]   ;;  %s680_s3 = inlined_call_operand.vmem [shape: bf16[128,32], index: 3, kind: output, shape index: {}]  }
   0x1   :  { %v491_v0 = vld [vmem:[%s677_s1 + $0x8] sm:$0xff]   ;;  %22 = vst.msk [vmem:[#allocation2 + $0x10] sm:$0xff] %vm19_vm0, %v501_v1  ;;  %20 = vst.msk [vmem:[#allocation2] sm:$0xff] %vm19_vm0, %v501_v1  ;;  %v492_v2 = vld [vmem:[%s677_s1] sm:$0xff]  }
   0x2   :  { %21 = vst.msk [vmem:[#allocation2 + $0x8] sm:$0xff] %vm19_vm0, %v501_v1  ;;  %23 = vst.msk [vmem:[#allocation2 + $0x18] sm:$0xff] %vm19_vm0, %v501_v1  ;;  %466 = vmatprep.subr.bf16.mxu0 %v491_v0  ;;  %486 = vmatprep.subr.bf16.mxu1 %v491_v0  ;;  %v493_v3 = vld [vmem:[%s678_s0] sm:$0xff]   ;;  %v495_v5 = vld [vmem:[%s678_s0 + $0x8] sm:$0xff]  }
   0x3   :  { %24 = vst.msk [vmem:[#allocation2 + $0x20] sm:$0xff] %vm19_vm0, %v501_v1  ;;  %25 = vst.msk [vmem:[#allocation2 + $0x28] sm:$0xff] %vm19_vm0, %v501_v1  ;;  %467 = vmatpush3.bf16.msra.mxu0 %v491_v0  ;;  %488 = vmatpush3.bf16.msra.mxu1 %v491_v0  ;;  %v494_v4 = vld [vmem:[%s678_s0 + $0x20] sm:$0xff]   ;;  %v496_v6 = vld [vmem:[%s678_s0 + $0x28] sm:$0xff]  }
   0x4   :  { %26 = vst.msk [vmem:[#allocation2 + $0x30] sm:$0xff] %vm19_vm0, %v501_v1  ;;  %27 = vst.msk [vmem:[#allocation2 + $0x38] sm:$0xff] %vm19_vm0, %v501_v1  ;;  %468 = vmatprep.subr.bf16.mxu0 %v492_v2  ;;  %487 = vmatprep.subr.bf16.mxu1 %v492_v2  ;;  %v497_v7 = vld [vmem:[%s678_s0 + $0x10] sm:$0xff]   ;;  %v499_v9 = vld [vmem:[%s678_s0 + $0x18] sm:$0xff]  }
   0x5   :  { %28 = vst.msk [vmem:[#allocation2 + $0x40] sm:$0xff] %vm19_vm0, %v501_v1  ;;  %29 = vst.msk [vmem:[#allocation2 + $0x48] sm:$0xff] %vm19_vm0, %v501_v1  ;;  %470 = vmatprep.mubr.msk.bf16.mxu0 %vm19_vm0, %v493_v3  ;;  %478 = vmatprep.mubr.msk.bf16.mxu1 %vm19_vm0, %v494_v4  ;;  %v498_v8 = vld [vmem:[%s678_s0 + $0x30] sm:$0xff]   ;;  %v500_v10 = vld [vmem:[%s678_s0 + $0x38] sm:$0xff]  }
   0x6   :  { %30 = vst.msk [vmem:[#allocation2 + $0x50] sm:$0xff] %vm19_vm0, %v501_v1  ;;  %31 = vst.msk [vmem:[#allocation2 + $0x58] sm:$0xff] %vm19_vm0, %v501_v1  ;;  %v585_v37 = vld [vmem:[%s679_s2] ss:$0 sm:$0xff] }
   0x7   :  { %32 = vst.msk [vmem:[#allocation2 + $0x60] sm:$0xff] %vm19_vm0, %v501_v1  ;;  %33 = vst.msk [vmem:[#allocation2 + $0x68] sm:$0xff] %vm19_vm0, %v501_v1  ;;  %469 = vmatpush3.bf16.msra.mxu0 %v492_v2  ;;  %489 = vmatpush3.bf16.msra.mxu1 %v492_v2 }
   0x8   :  { %34 = vst.msk [vmem:[#allocation2 + $0x70] sm:$0xff] %vm19_vm0, %v501_v1  ;;  %35 = vst.msk [vmem:[#allocation2 + $0x78] sm:$0xff] %vm19_vm0, %v501_v1  ;;  %v38_v11 = vld [vmem:[#allocation2 + $0x10] sm:$0xff]  ;;  %v36_v15 = vld [vmem:[#allocation2] sm:$0xff] }
   0x9   :  { %v39_v21 = vld [vmem:[#allocation2 + $0x18] sm:$0xff]  ;;  %v37_v27 = vld [vmem:[#allocation2 + $0x8] sm:$0xff] }
   0xa   :  { %471 = vmatmul.mubr.msk.bf16.vlgmr.msra.gmra.mxu0 %vm19_vm0, %v495_v5  ;;  %479 = vmatmul.mubr.msk.bf16.vlgmr.msra.gmra.mxu1 %vm19_vm0, %v496_v6  ;;  %v40_v40 = vld [vmem:[#allocation2 + $0x20] sm:$0xff]  ;;  %v41_v62 = vld [vmem:[#allocation2 + $0x28] sm:$0xff] }
   0xb   :  { %474 = vmatprep.mubr.msk.bf16.mxu0 %vm19_vm0, %v497_v7  ;;  %482 = vmatprep.mubr.msk.bf16.mxu1 %vm19_vm0, %v498_v8  ;;  %v42_v33 = vld [vmem:[#allocation2 + $0x30] sm:$0xff]  ;;  %v43_v52 = vld [vmem:[#allocation2 + $0x38] sm:$0xff] }
   0xc   :  { %v44_v16 = vld [vmem:[#allocation2 + $0x40] sm:$0xff]  ;;  %v45_v28 = vld [vmem:[#allocation2 + $0x48] sm:$0xff] }
   0xd   :  { %v46_v12 = vld [vmem:[#allocation2 + $0x50] sm:$0xff]  ;;  %v47_v22 = vld [vmem:[#allocation2 + $0x58] sm:$0xff] }
   0xe   :  { %v48_v41 = vld [vmem:[#allocation2 + $0x60] sm:$0xff]  ;;  %v49_v63 = vld [vmem:[#allocation2 + $0x68] sm:$0xff] }
   0xf   :  { %v50_v34 = vld [vmem:[#allocation2 + $0x70] sm:$0xff]  ;;  %v51_v53 = vld [vmem:[#allocation2 + $0x78] sm:$0xff] }
  0x12   :  { %475 = vmatmul.mubr.msk.bf16.gmra.mxu0 %vm19_vm0, %v499_v9  ;;  %483 = vmatmul.mubr.msk.bf16.gmra.mxu1 %vm19_vm0, %v500_v10 }
  0xca   :  { %v472_v13 = vpop.f32.mrf.mxu0  ;;  %v480_v14 = vpop.f32.mrf.mxu1 }
  0xcb   :  { %v248_v17 = vadd.f32 %v472_v13, %v38_v11  ;;  %v256_v18 = vadd.f32 %v480_v14, %v46_v12 }
  0xcc   :  { %v183_v19 = vpop.f32.mrf.mxu0  ;;  %v215_v20 = vpop.f32.mrf.mxu1 }
  0xcd   :  { %264 = vst.msk [vmem:[#allocation2 + $0x10] sm:$0xff] %vm19_vm0, %v248_v17  ;;  %272 = vst.msk [vmem:[#allocation2 + $0x50] sm:$0xff] %vm19_vm0, %v256_v18  ;;  %v246_v23 = vadd.f32 %v183_v19, %v36_v15  ;;  %v254_v24 = vadd.f32 %v215_v20, %v44_v16 }
  0xce   :  { %v473_v25 = vpop.f32.mrf.mxu0  ;;  %v481_v26 = vpop.f32.mrf.mxu1 }
  0xcf   :  { %262 = vst.msk [vmem:[#allocation2] sm:$0xff] %vm19_vm0, %v246_v23  ;;  %270 = vst.msk [vmem:[#allocation2 + $0x40] sm:$0xff] %vm19_vm0, %v254_v24  ;;  %v249_v29 = vadd.f32 %v473_v25, %v39_v21  ;;  %v257_v30 = vadd.f32 %v481_v26, %v47_v22 }
  0xd0   :  { %v186_v31 = vpop.f32.mrf.mxu0  ;;  %v218_v32 = vpop.f32.mrf.mxu1 }
  0xd1   :  { %265 = vst.msk [vmem:[#allocation2 + $0x18] sm:$0xff] %vm19_vm0, %v249_v29  ;;  %273 = vst.msk [vmem:[#allocation2 + $0x58] sm:$0xff] %vm19_vm0, %v257_v30  ;;  %v247_v35 = vadd.f32 %v186_v31, %v37_v27  ;;  %v255_v36 = vadd.f32 %v218_v32, %v45_v28 }
  0xd2   :  { %v476_v38 = vpop.f32.mrf.mxu0  ;;  %v484_v39 = vpop.f32.mrf.mxu1 }
  0xd3   :  { %263 = vst.msk [vmem:[#allocation2 + $0x8] sm:$0xff] %vm19_vm0, %v247_v35  ;;  %271 = vst.msk [vmem:[#allocation2 + $0x48] sm:$0xff] %vm19_vm0, %v255_v36  ;;  %v252_v42 = vadd.f32 %v476_v38, %v42_v33  ;;  %v260_v43 = vadd.f32 %v484_v39, %v50_v34 }
  0xd4   :  { %v283_v44 = vld [vmem:[#allocation2 + $0x10] sm:$0xff]  ;;  %v199_v46 = vpop.f32.mrf.mxu0  ;;  %v231_v47 = vpop.f32.mrf.mxu1 }
  0xd5   :  { %v291_v45 = vld [vmem:[#allocation2 + $0x50] sm:$0xff]  ;;  %v306_v48 = vadd.f32 %v585_v37, %v283_v44  ;;  %268 = vst.msk [vmem:[#allocation2 + $0x30] sm:$0xff] %vm19_vm0, %v252_v42  ;;  %276 = vst.msk [vmem:[#allocation2 + $0x70] sm:$0xff] %vm19_vm0, %v260_v43  ;;  %v250_v50 = vadd.f32 %v199_v46, %v40_v40  ;;  %v258_v51 = vadd.f32 %v231_v47, %v48_v41 }
  0xd6   :  { %v314_v49 = vadd.f32 %v585_v37, %v291_v45  ;;  %v281_v54 = vld [vmem:[#allocation2] sm:$0xff]  ;;  %v477_v56 = vpop.f32.mrf.mxu0  ;;  %v485_v57 = vpop.f32.mrf.mxu1 }
  0xd7   :  { %v289_v55 = vld [vmem:[#allocation2 + $0x40] sm:$0xff]  ;;  %v442_v58 = vpack.c.bf16 %v306_v48, %v306_v48  ;;  %v304_v60 = vadd.f32 %v585_v37, %v281_v54  ;;  %266 = vst.msk [vmem:[#allocation2 + $0x20] sm:$0xff] %vm19_vm0, %v250_v50  ;;  %274 = vst.msk [vmem:[#allocation2 + $0x60] sm:$0xff] %vm19_vm0, %v258_v51  ;;  %v253_v2 = vadd.f32 %v477_v56, %v43_v52 }
  0xd8   :  { %v450_v59 = vpack.c.bf16 %v314_v49, %v314_v49  ;;  %v312_v61 = vadd.f32 %v585_v37, %v289_v55  ;;  %v284_v0 = vld [vmem:[#allocation2 + $0x18] sm:$0xff]  ;;  %v261_v3 = vadd.f32 %v485_v57, %v51_v53  ;;  %v202_v4 = vpop.f32.mrf.mxu0  ;;  %v234_v5 = vpop.f32.mrf.mxu1 }
  0xd9   :  { %v292_v1 = vld [vmem:[#allocation2 + $0x58] sm:$0xff]  ;;  %387 = vst.msk [vmem:[%s680_s3 + $0x8] sm:$0xf] %vm384_vm1, %v442_v58  ;;  %v440_v6 = vpack.c.bf16 %v304_v60, %v304_v60  ;;  %v307_v8 = vadd.f32 %v585_v37, %v284_v0  ;;  %v251_v12 = vadd.f32 %v202_v4, %v41_v62  ;;  %v259_v13 = vadd.f32 %v234_v5, %v49_v63 }
  0xda   :  { %395 = vst.msk [vmem:[%s680_s3 + $0x28] sm:$0xf] %vm384_vm1, %v450_v59  ;;  %v448_v7 = vpack.c.bf16 %v312_v61, %v312_v61  ;;  %v315_v9 = vadd.f32 %v585_v37, %v292_v1  ;;  %v282_v10 = vld [vmem:[#allocation2 + $0x8] sm:$0xff] }
  0xdb   :  { %v290_v11 = vld [vmem:[#allocation2 + $0x48] sm:$0xff]  ;;  %269 = vst.msk [vmem:[#allocation2 + $0x38] sm:$0xff] %vm19_vm0, %v253_v2  ;;  %277 = vst.msk [vmem:[#allocation2 + $0x78] sm:$0xff] %vm19_vm0, %v261_v3  ;;  %v443_v14 = vpack.c.bf16 %v307_v8, %v307_v8  ;;  %v305_v16 = vadd.f32 %v585_v37, %v282_v10 }
  0xdc   :  { %385 = vst.msk [vmem:[%s680_s3] sm:$0xf] %vm384_vm1, %v440_v6  ;;  %393 = vst.msk [vmem:[%s680_s3 + $0x20] sm:$0xf] %vm384_vm1, %v448_v7  ;;  %v451_v15 = vpack.c.bf16 %v315_v9, %v315_v9  ;;  %v313_v17 = vadd.f32 %v585_v37, %v290_v11  ;;  %v287_v18 = vld [vmem:[#allocation2 + $0x30] sm:$0xff] }
  0xdd   :  { %v295_v19 = vld [vmem:[#allocation2 + $0x70] sm:$0xff]  ;;  %267 = vst.msk [vmem:[#allocation2 + $0x28] sm:$0xff] %vm19_vm0, %v251_v12  ;;  %275 = vst.msk [vmem:[#allocation2 + $0x68] sm:$0xff] %vm19_vm0, %v259_v13  ;;  %v441_v20 = vpack.c.bf16 %v305_v16, %v305_v16  ;;  %v310_v22 = vadd.f32 %v585_v37, %v287_v18 }
  0xde   :  { %388 = vst.msk [vmem:[%s680_s3 + $0xc] sm:$0xf] %vm384_vm1, %v443_v14  ;;  %396 = vst.msk [vmem:[%s680_s3 + $0x2c] sm:$0xf] %vm384_vm1, %v451_v15  ;;  %v449_v21 = vpack.c.bf16 %v313_v17, %v313_v17  ;;  %v318_v23 = vadd.f32 %v585_v37, %v295_v19  ;;  %v285_v24 = vld [vmem:[#allocation2 + $0x20] sm:$0xff] }
  0xdf   :  { %v293_v25 = vld [vmem:[#allocation2 + $0x60] sm:$0xff]  ;;  %386 = vst.msk [vmem:[%s680_s3 + $0x4] sm:$0xf] %vm384_vm1, %v441_v20  ;;  %v446_v26 = vpack.c.bf16 %v310_v22, %v310_v22  ;;  %v308_v28 = vadd.f32 %v585_v37, %v285_v24 }
  0xe0   :  { %394 = vst.msk [vmem:[%s680_s3 + $0x24] sm:$0xf] %vm384_vm1, %v449_v21  ;;  %v454_v27 = vpack.c.bf16 %v318_v23, %v318_v23  ;;  %v316_v29 = vadd.f32 %v585_v37, %v293_v25 }
  0xe1   :  { %391 = vst.msk [vmem:[%s680_s3 + $0x18] sm:$0xf] %vm384_vm1, %v446_v26  ;;  %v444_v30 = vpack.c.bf16 %v308_v28, %v308_v28 }
  0xe2   :  { %399 = vst.msk [vmem:[%s680_s3 + $0x38] sm:$0xf] %vm384_vm1, %v454_v27  ;;  %v452_v31 = vpack.c.bf16 %v316_v29, %v316_v29  ;;  %v288_v32 = vld [vmem:[#allocation2 + $0x38] sm:$0xff] }
  0xe3   :  { %v296_v33 = vld [vmem:[#allocation2 + $0x78] sm:$0xff]  ;;  %v311_v34 = vadd.f32 %v585_v37, %v288_v32  ;;  %389 = vst.msk [vmem:[%s680_s3 + $0x10] sm:$0xf] %vm384_vm1, %v444_v30 }
  0xe4   :  { %v319_v35 = vadd.f32 %v585_v37, %v296_v33  ;;  %397 = vst.msk [vmem:[%s680_s3 + $0x30] sm:$0xf] %vm384_vm1, %v452_v31  ;;  %v286_v36 = vld [vmem:[#allocation2 + $0x28] sm:$0xff] }
  0xe5   :  { %v294_v38 = vld [vmem:[#allocation2 + $0x68] sm:$0xff]  ;;  %v447_v39 = vpack.c.bf16 %v311_v34, %v311_v34  ;;  %v309_v41 = vadd.f32 %v585_v37, %v286_v36 }
  0xe6   :  { %v455_v40 = vpack.c.bf16 %v319_v35, %v319_v35  ;;  %v317_v42 = vadd.f32 %v585_v37, %v294_v38 }
  0xe7   :  { %392 = vst.msk [vmem:[%s680_s3 + $0x1c] sm:$0xf] %vm384_vm1, %v447_v39  ;;  %v445_v43 = vpack.c.bf16 %v309_v41, %v309_v41 }
  0xe8   :  { %400 = vst.msk [vmem:[%s680_s3 + $0x3c] sm:$0xf] %vm384_vm1, %v455_v40  ;;  %v453_v44 = vpack.c.bf16 %v317_v42, %v317_v42 }
  0xe9   :  { %390 = vst.msk [vmem:[%s680_s3 + $0x14] sm:$0xf] %vm384_vm1, %v445_v43 }
  0xea   :  { %398 = vst.msk [vmem:[%s680_s3 + $0x34] sm:$0xf] %vm384_vm1, %v453_v44 }

// kernel: pvt_attention_forward.9
= control target key start
LH: loop header
LB: loop body
LE: loop exit
PB: predicated region body
PF: predicated region fallthrough
CT: control target
= control target key end

     0   :  { %vm19_vm0 = vcmask 261120   ;;  %v404_v1 = vmov 0.0   ;;  %s580_s1 = inlined_call_operand.vmem [shape: bf16[32,32], index: 1, kind: input, shape index: {}]   ;;  %s581_s0 = inlined_call_operand.vmem [shape: bf16[128,32], index: 0, kind: input, shape index: {}]   ;;  %s582_s2 = inlined_call_operand.vmem [shape: f32[1,32], index: 2, kind: input, shape index: {}]   ;;  %s583_s3 = inlined_call_operand.vmem [shape: f32[128,32], index: 3, kind: output, shape index: {}]  }
   0x1   :  { %v394_v0 = vld [vmem:[%s580_s1 + $0x8] sm:$0xff]   ;;  %22 = vst.msk [vmem:[#allocation2 + $0x10] sm:$0xff] %vm19_vm0, %v404_v1  ;;  %20 = vst.msk [vmem:[#allocation2] sm:$0xff] %vm19_vm0, %v404_v1  ;;  %v395_v2 = vld [vmem:[%s580_s1] sm:$0xff]  }
   0x2   :  { %21 = vst.msk [vmem:[#allocation2 + $0x8] sm:$0xff] %vm19_vm0, %v404_v1  ;;  %23 = vst.msk [vmem:[#allocation2 + $0x18] sm:$0xff] %vm19_vm0, %v404_v1  ;;  %369 = vmatprep.subr.bf16.mxu0 %v394_v0  ;;  %389 = vmatprep.subr.bf16.mxu1 %v394_v0  ;;  %v396_v3 = vld [vmem:[%s581_s0] sm:$0xff]   ;;  %v398_v5 = vld [vmem:[%s581_s0 + $0x8] sm:$0xff]  }
   0x3   :  { %24 = vst.msk [vmem:[#allocation2 + $0x20] sm:$0xff] %vm19_vm0, %v404_v1  ;;  %25 = vst.msk [vmem:[#allocation2 + $0x28] sm:$0xff] %vm19_vm0, %v404_v1  ;;  %370 = vmatpush3.bf16.msra.mxu0 %v394_v0  ;;  %391 = vmatpush3.bf16.msra.mxu1 %v394_v0  ;;  %v397_v4 = vld [vmem:[%s581_s0 + $0x20] sm:$0xff]   ;;  %v399_v6 = vld [vmem:[%s581_s0 + $0x28] sm:$0xff]  }
   0x4   :  { %26 = vst.msk [vmem:[#allocation2 + $0x30] sm:$0xff] %vm19_vm0, %v404_v1  ;;  %27 = vst.msk [vmem:[#allocation2 + $0x38] sm:$0xff] %vm19_vm0, %v404_v1  ;;  %371 = vmatprep.subr.bf16.mxu0 %v395_v2  ;;  %390 = vmatprep.subr.bf16.mxu1 %v395_v2  ;;  %v400_v7 = vld [vmem:[%s581_s0 + $0x10] sm:$0xff]   ;;  %v402_v9 = vld [vmem:[%s581_s0 + $0x18] sm:$0xff]  }
   0x5   :  { %28 = vst.msk [vmem:[#allocation2 + $0x40] sm:$0xff] %vm19_vm0, %v404_v1  ;;  %29 = vst.msk [vmem:[#allocation2 + $0x48] sm:$0xff] %vm19_vm0, %v404_v1  ;;  %373 = vmatprep.mubr.msk.bf16.mxu0 %vm19_vm0, %v396_v3  ;;  %381 = vmatprep.mubr.msk.bf16.mxu1 %vm19_vm0, %v397_v4  ;;  %v401_v8 = vld [vmem:[%s581_s0 + $0x30] sm:$0xff]   ;;  %v403_v10 = vld [vmem:[%s581_s0 + $0x38] sm:$0xff]  }
   0x6   :  { %30 = vst.msk [vmem:[#allocation2 + $0x50] sm:$0xff] %vm19_vm0, %v404_v1  ;;  %31 = vst.msk [vmem:[#allocation2 + $0x58] sm:$0xff] %vm19_vm0, %v404_v1  ;;  %v488_v37 = vld [vmem:[%s582_s2] ss:$0 sm:$0xff] }
   0x7   :  { %32 = vst.msk [vmem:[#allocation2 + $0x60] sm:$0xff] %vm19_vm0, %v404_v1  ;;  %33 = vst.msk [vmem:[#allocation2 + $0x68] sm:$0xff] %vm19_vm0, %v404_v1  ;;  %372 = vmatpush3.bf16.msra.mxu0 %v395_v2  ;;  %392 = vmatpush3.bf16.msra.mxu1 %v395_v2 }
   0x8   :  { %34 = vst.msk [vmem:[#allocation2 + $0x70] sm:$0xff] %vm19_vm0, %v404_v1  ;;  %35 = vst.msk [vmem:[#allocation2 + $0x78] sm:$0xff] %vm19_vm0, %v404_v1  ;;  %v38_v11 = vld [vmem:[#allocation2 + $0x10] sm:$0xff]  ;;  %v36_v15 = vld [vmem:[#allocation2] sm:$0xff] }
   0x9   :  { %v39_v21 = vld [vmem:[#allocation2 + $0x18] sm:$0xff]  ;;  %v37_v27 = vld [vmem:[#allocation2 + $0x8] sm:$0xff] }
   0xa   :  { %374 = vmatmul.mubr.msk.bf16.vlgmr.msra.gmra.mxu0 %vm19_vm0, %v398_v5  ;;  %382 = vmatmul.mubr.msk.bf16.vlgmr.msra.gmra.mxu1 %vm19_vm0, %v399_v6  ;;  %v40_v40 = vld [vmem:[#allocation2 + $0x20] sm:$0xff]  ;;  %v41_v54 = vld [vmem:[#allocation2 + $0x28] sm:$0xff] }
   0xb   :  { %377 = vmatprep.mubr.msk.bf16.mxu0 %vm19_vm0, %v400_v7  ;;  %385 = vmatprep.mubr.msk.bf16.mxu1 %vm19_vm0, %v401_v8  ;;  %v42_v33 = vld [vmem:[#allocation2 + $0x30] sm:$0xff]  ;;  %v43_v44 = vld [vmem:[#allocation2 + $0x38] sm:$0xff] }
   0xc   :  { %v44_v16 = vld [vmem:[#allocation2 + $0x40] sm:$0xff]  ;;  %v45_v28 = vld [vmem:[#allocation2 + $0x48] sm:$0xff] }
   0xd   :  { %v46_v12 = vld [vmem:[#allocation2 + $0x50] sm:$0xff]  ;;  %v47_v22 = vld [vmem:[#allocation2 + $0x58] sm:$0xff] }
   0xe   :  { %v48_v41 = vld [vmem:[#allocation2 + $0x60] sm:$0xff]  ;;  %v49_v59 = vld [vmem:[#allocation2 + $0x68] sm:$0xff] }
   0xf   :  { %v50_v34 = vld [vmem:[#allocation2 + $0x70] sm:$0xff]  ;;  %v51_v49 = vld [vmem:[#allocation2 + $0x78] sm:$0xff] }
  0x12   :  { %378 = vmatmul.mubr.msk.bf16.gmra.mxu0 %vm19_vm0, %v402_v9  ;;  %386 = vmatmul.mubr.msk.bf16.gmra.mxu1 %vm19_vm0, %v403_v10 }
  0xca   :  { %v375_v13 = vpop.f32.mrf.mxu0  ;;  %v383_v14 = vpop.f32.mrf.mxu1 }
  0xcb   :  { %v248_v17 = vadd.f32 %v375_v13, %v38_v11  ;;  %v256_v18 = vadd.f32 %v383_v14, %v46_v12 }
  0xcc   :  { %v183_v19 = vpop.f32.mrf.mxu0  ;;  %v215_v20 = vpop.f32.mrf.mxu1 }
  0xcd   :  { %264 = vst.msk [vmem:[#allocation2 + $0x10] sm:$0xff] %vm19_vm0, %v248_v17  ;;  %272 = vst.msk [vmem:[#allocation2 + $0x50] sm:$0xff] %vm19_vm0, %v256_v18  ;;  %v246_v23 = vadd.f32 %v183_v19, %v36_v15  ;;  %v254_v24 = vadd.f32 %v215_v20, %v44_v16 }
  0xce   :  { %v376_v25 = vpop.f32.mrf.mxu0  ;;  %v384_v26 = vpop.f32.mrf.mxu1 }
  0xcf   :  { %262 = vst.msk [vmem:[#allocation2] sm:$0xff] %vm19_vm0, %v246_v23  ;;  %270 = vst.msk [vmem:[#allocation2 + $0x40] sm:$0xff] %vm19_vm0, %v254_v24  ;;  %v249_v29 = vadd.f32 %v376_v25, %v39_v21  ;;  %v257_v30 = vadd.f32 %v384_v26, %v47_v22 }
  0xd0   :  { %v186_v31 = vpop.f32.mrf.mxu0  ;;  %v218_v32 = vpop.f32.mrf.mxu1 }
  0xd1   :  { %265 = vst.msk [vmem:[#allocation2 + $0x18] sm:$0xff] %vm19_vm0, %v249_v29  ;;  %273 = vst.msk [vmem:[#allocation2 + $0x58] sm:$0xff] %vm19_vm0, %v257_v30  ;;  %v247_v35 = vadd.f32 %v186_v31, %v37_v27  ;;  %v255_v36 = vadd.f32 %v218_v32, %v45_v28 }
  0xd2   :  { %v379_v38 = vpop.f32.mrf.mxu0  ;;  %v387_v39 = vpop.f32.mrf.mxu1 }
  0xd3   :  { %263 = vst.msk [vmem:[#allocation2 + $0x8] sm:$0xff] %vm19_vm0, %v247_v35  ;;  %271 = vst.msk [vmem:[#allocation2 + $0x48] sm:$0xff] %vm19_vm0, %v255_v36  ;;  %v252_v42 = vadd.f32 %v379_v38, %v42_v33  ;;  %v260_v43 = vadd.f32 %v387_v39, %v50_v34 }
  0xd4   :  { %v283_v45 = vld [vmem:[#allocation2 + $0x10] sm:$0xff]  ;;  %v199_v47 = vpop.f32.mrf.mxu0  ;;  %v231_v48 = vpop.f32.mrf.mxu1 }
  0xd5   :  { %v291_v46 = vld [vmem:[#allocation2 + $0x50] sm:$0xff]  ;;  %v306_v50 = vadd.f32 %v488_v37, %v283_v45  ;;  %268 = vst.msk [vmem:[#allocation2 + $0x30] sm:$0xff] %vm19_vm0, %v252_v42  ;;  %276 = vst.msk [vmem:[#allocation2 + $0x70] sm:$0xff] %vm19_vm0, %v260_v43  ;;  %v250_v52 = vadd.f32 %v199_v47, %v40_v40  ;;  %v258_v53 = vadd.f32 %v231_v48, %v48_v41 }
  0xd6   :  { %v314_v51 = vadd.f32 %v488_v37, %v291_v46  ;;  %v281_v55 = vld [vmem:[#allocation2] sm:$0xff]  ;;  %v380_v57 = vpop.f32.mrf.mxu0  ;;  %v388_v58 = vpop.f32.mrf.mxu1 }
  0xd7   :  { %v289_v56 = vld [vmem:[#allocation2 + $0x40] sm:$0xff]  ;;  %322 = vst.msk [vmem:[%s583_s3 + $0x10] sm:$0xff] %vm19_vm0, %v306_v50  ;;  %v304_v60 = vadd.f32 %v488_v37, %v281_v55  ;;  %266 = vst.msk [vmem:[#allocation2 + $0x20] sm:$0xff] %vm19_vm0, %v250_v52  ;;  %v253_v62 = vadd.f32 %v380_v57, %v43_v44  ;;  %v261_v63 = vadd.f32 %v388_v58, %v51_v49 }
  0xd8   :  { %330 = vst.msk [vmem:[%s583_s3 + $0x50] sm:$0xff] %vm19_vm0, %v314_v51  ;;  %v312_v61 = vadd.f32 %v488_v37, %v289_v56  ;;  %274 = vst.msk [vmem:[#allocation2 + $0x60] sm:$0xff] %vm19_vm0, %v258_v53  ;;  %v284_v0 = vld [vmem:[#allocation2 + $0x18] sm:$0xff]  ;;  %v202_v2 = vpop.f32.mrf.mxu0  ;;  %v234_v3 = vpop.f32.mrf.mxu1 }
  0xd9   :  { %v292_v1 = vld [vmem:[#allocation2 + $0x58] sm:$0xff]  ;;  %320 = vst.msk [vmem:[%s583_s3] sm:$0xff] %vm19_vm0, %v304_v60  ;;  %v307_v4 = vadd.f32 %v488_v37, %v284_v0  ;;  %269 = vst.msk [vmem:[#allocation2 + $0x38] sm:$0xff] %vm19_vm0, %v253_v62  ;;  %v251_v6 = vadd.f32 %v202_v2, %v41_v54  ;;  %v259_v7 = vadd.f32 %v234_v3, %v49_v59 }
  0xda   :  { %328 = vst.msk [vmem:[%s583_s3 + $0x40] sm:$0xff] %vm19_vm0, %v312_v61  ;;  %v315_v5 = vadd.f32 %v488_v37, %v292_v1  ;;  %277 = vst.msk [vmem:[#allocation2 + $0x78] sm:$0xff] %vm19_vm0, %v261_v63  ;;  %v282_v8 = vld [vmem:[#allocation2 + $0x8] sm:$0xff] }
  0xdb   :  { %v290_v9 = vld [vmem:[#allocation2 + $0x48] sm:$0xff]  ;;  %323 = vst.msk [vmem:[%s583_s3 + $0x18] sm:$0xff] %vm19_vm0, %v307_v4  ;;  %v305_v10 = vadd.f32 %v488_v37, %v282_v8  ;;  %267 = vst.msk [vmem:[#allocation2 + $0x28] sm:$0xff] %vm19_vm0, %v251_v6 }
  0xdc   :  { %331 = vst.msk [vmem:[%s583_s3 + $0x58] sm:$0xff] %vm19_vm0, %v315_v5  ;;  %v313_v11 = vadd.f32 %v488_v37, %v290_v9  ;;  %275 = vst.msk [vmem:[#allocation2 + $0x68] sm:$0xff] %vm19_vm0, %v259_v7  ;;  %v287_v12 = vld [vmem:[#allocation2 + $0x30] sm:$0xff] }
  0xdd   :  { %v295_v13 = vld [vmem:[#allocation2 + $0x70] sm:$0xff]  ;;  %321 = vst.msk [vmem:[%s583_s3 + $0x8] sm:$0xff] %vm19_vm0, %v305_v10  ;;  %v310_v14 = vadd.f32 %v488_v37, %v287_v12 }
  0xde   :  { %329 = vst.msk [vmem:[%s583_s3 + $0x48] sm:$0xff] %vm19_vm0, %v313_v11  ;;  %v318_v15 = vadd.f32 %v488_v37, %v295_v13  ;;  %v285_v16 = vld [vmem:[#allocation2 + $0x20] sm:$0xff] }
  0xdf   :  { %v293_v17 = vld [vmem:[#allocation2 + $0x60] sm:$0xff]  ;;  %326 = vst.msk [vmem:[%s583_s3 + $0x30] sm:$0xff] %vm19_vm0, %v310_v14  ;;  %v308_v18 = vadd.f32 %v488_v37, %v285_v16 }
  0xe0   :  { %334 = vst.msk [vmem:[%s583_s3 + $0x70] sm:$0xff] %vm19_vm0, %v318_v15  ;;  %v316_v19 = vadd.f32 %v488_v37, %v293_v17  ;;  %v288_v20 = vld [vmem:[#allocation2 + $0x38] sm:$0xff] }
  0xe1   :  { %v296_v21 = vld [vmem:[#allocation2 + $0x78] sm:$0xff]  ;;  %324 = vst.msk [vmem:[%s583_s3 + $0x20] sm:$0xff] %vm19_vm0, %v308_v18  ;;  %v311_v22 = vadd.f32 %v488_v37, %v288_v20 }
  0xe2   :  { %332 = vst.msk [vmem:[%s583_s3 + $0x60] sm:$0xff] %vm19_vm0, %v316_v19  ;;  %v319_v23 = vadd.f32 %v488_v37, %v296_v21  ;;  %v286_v24 = vld [vmem:[#allocation2 + $0x28] sm:$0xff] }
  0xe3   :  { %v294_v25 = vld [vmem:[#allocation2 + $0x68] sm:$0xff]  ;;  %327 = vst.msk [vmem:[%s583_s3 + $0x38] sm:$0xff] %vm19_vm0, %v311_v22  ;;  %v309_v26 = vadd.f32 %v488_v37, %v286_v24 }
  0xe4   :  { %335 = vst.msk [vmem:[%s583_s3 + $0x78] sm:$0xff] %vm19_vm0, %v319_v23  ;;  %v317_v27 = vadd.f32 %v488_v37, %v294_v25 }
  0xe5   :  { %325 = vst.msk [vmem:[%s583_s3 + $0x28] sm:$0xff] %vm19_vm0, %v309_v26 }
  0xe6   :  { %333 = vst.msk [vmem:[%s583_s3 + $0x68] sm:$0xff] %vm19_vm0, %v317_v27 }

// kernel: pvt_attention_forward.8
= control target key start
LH: loop header
LB: loop body
LE: loop exit
PB: predicated region body
PF: predicated region fallthrough
CT: control target
= control target key end

     0   :  { %s1250_s12 = smov 0   ;;  %s1252_s13 = smov 0   ;;  %s1521_s0 = inlined_call_operand.vmem [shape: bf16[4,64,16], index: 0, kind: input, shape index: {}]   ;;  %s1522_s1 = inlined_call_operand.vmem [shape: bf16[4,16,16], index: 1, kind: input, shape index: {}]   ;;  %s1523_s2 = inlined_call_operand.vmem [shape: bf16[4,16,16], index: 2, kind: input, shape index: {}]   ;;  %s1524_s3 = inlined_call_operand.vmem [shape: bf16[4,64,16], index: 3, kind: output, shape index: {}]  }
   0x1   :  { %s1254_s14 = smov 0  }
   0x2 LB: > { %s32_s15 = sadd.s32 1, %s1221_s13  ;;  %p1044_p0 = scmp.ge.s32.totalorder %s1225_s14, 1  ;;  %s1225_s14 = sphi %s1254_s14, %s13_s14   ;;  %s1221_s13 = sphi %s1252_s13, %s1526_s13   ;;  %s1217_s12 = sphi %s1250_s12, %s1525_s12  }
   0x3   : > { %p34_p1 = scmp.ge.s32.totalorder %s32_s15, 4  ;;  %p199_p2 = scmp.lt.s32.totalorder %s1225_s14, 5 }
   0x5   : > { %s1528_s15 = smov (%p34_p1, %s32_s15), 0  ;;  %p200_p3 = pnand %p1044_p0, %p199_p2 }
   0x6   : > { %p250_p4 = scmp.lt.s32.totalorder (!%p200_p3), %s1217_s12, 3 }
   0x7   : > { %203 = sbr.rel (%p200_p3) target bundleno = 821 (0x335), region = 32 }
   0xc   : > { %s1530_s12 = smov (!%p250_p4, %s1217_s12), 3  ;;  %vm311_vm0 = vcmask 130048   ;;  %vm294_vm1 = vcmask 7168   ;;  %v1227_v6 = vmov -inf   ;;  %v1228_v27 = vmov 0  }
   0xd   : > { %s1077_s16 = sshll.u32 %s1530_s12, 5  ;;  %s1078_s17 = sshll.u32 %s1530_s12, 3  ;;  %297 = vst.msk [vmem:[#allocation2 + $0x10] sm:$0xff] %vm294_vm1, %v1227_v6  ;;  %295 = vst.msk [vmem:[#allocation2] sm:$0xff] %vm294_vm1, %v1227_v6  ;;  %1148 = vset.pattern.permute.xlu1 %v1228_v27  ;;  %1147 = vset.pattern.permute.xlu0 %v1228_v27  ;;  %v1229_v32 = vmov 0.0   ;;  %vm905_vm2 = vcmask 125952  }
   0xe   : > { %s257_s20 = scalar_lea.vmem %s1521_s0, %s1077_s16  ;;  %s267_s23 = scalar_lea.vmem %s1522_s1, %s1078_s17  ;;  %296 = vst.msk [vmem:[#allocation2 + $0x8] sm:$0xff] %vm294_vm1, %v1227_v6  ;;  %298 = vst.msk [vmem:[#allocation2 + $0x18] sm:$0xff] %vm294_vm1, %v1227_v6 }
   0xf   : > { %v1149_v0 = vld [vmem:[%s267_s23] sm:$0xff]   ;;  %v1151_v3 = vld [vmem:[%s257_s20 + $0x8] sm:$0xff]   ;;  %v1152_v4 = vld [vmem:[%s257_s20 + $0x10] sm:$0xff]   ;;  %299 = vst.msk [vmem:[#allocation2 + $0x20] sm:$0xff] %vm294_vm1, %v1227_v6  ;;  %s277_s26 = scalar_lea.vmem %s1523_s2, %s1078_s17  ;;  %s1494_s29 = scalar_lea.vmem %s1524_s3, %s1077_s16 }
  0x10   : > { %v1150_v1 = vld [vmem:[%s257_s20] sm:$0xff]   ;;  %1119 = vmatprep.subr.msk.bf16.mxu0 %vm311_vm0, %v1149_v0  ;;  %v369_v2 = vsel %vm311_vm0, %v1149_v0, 0  ;;  %v1153_v5 = vld [vmem:[%s257_s20 + $0x18] sm:$0xff]   ;;  %300 = vst.msk [vmem:[#allocation2 + $0x28] sm:$0xff] %vm294_vm1, %v1227_v6  ;;  %301 = vst.msk [vmem:[#allocation2 + $0x30] sm:$0xff] %vm294_vm1, %v1227_v6 }
  0x11   : > { %1100 = vmatpush3.bf16.xpose.msra.mxu0 %v369_v2  ;;  %1101 = vmatprep.mubr.msk.bf16.mxu0 %vm311_vm0, %v1150_v1  ;;  %302 = vst.msk [vmem:[#allocation2 + $0x38] sm:$0xff] %vm294_vm1, %v1227_v6  ;;  %305 = vst.msk [vmem:[#allocation3 + $0x10] sm:$0xff] %vm294_vm1, %v1229_v32  ;;  %v1154_v1 = vld [vmem:[%s277_s26] sm:$0xff]  }
  0x12   : > { %303 = vst.msk [vmem:[#allocation3] sm:$0xff] %vm294_vm1, %v1229_v32  ;;  %304 = vst.msk [vmem:[#allocation3 + $0x8] sm:$0xff] %vm294_vm1, %v1229_v32  ;;  %1109 = vmatprep.subr.bf16.mxu1 %v1154_v1 }
  0x13   : > { %306 = vst.msk [vmem:[#allocation3 + $0x18] sm:$0xff] %vm294_vm1, %v1229_v32  ;;  %307 = vst.msk [vmem:[#allocation3 + $0x20] sm:$0xff] %vm294_vm1, %v1229_v32  ;;  %1110 = vmatpush3.bf16.msra.mxu1 %v1154_v1 }
  0x14   : > { %308 = vst.msk [vmem:[#allocation3 + $0x28] sm:$0xff] %vm294_vm1, %v1229_v32  ;;  %309 = vst.msk [vmem:[#allocation3 + $0x30] sm:$0xff] %vm294_vm1, %v1229_v32  ;;  %v1344_v33 = vld [vmem:[#allocation2 + $0x10] sm:$0xff]  ;;  %v1346_v35 = vld [vmem:[#allocation2] sm:$0xff] }
  0x15   : > { %310 = vst.msk [vmem:[#allocation3 + $0x38] sm:$0xff] %vm294_vm1, %v1229_v32  ;;  %v1351_v38 = vld [vmem:[#allocation2 + $0x18] sm:$0xff]  ;;  %v1361_v42 = vld [vmem:[#allocation2 + $0x8] sm:$0xff] }
  0x16   : > { %312 = vst.msk [vmem:[#allocation4] sm:$0xff] %vm311_vm0, %v1229_v32  ;;  %313 = vst.msk [vmem:[#allocation4 + $0x8] sm:$0xff] %vm311_vm0, %v1229_v32  ;;  %v1379_v48 = vld [vmem:[#allocation2 + $0x20] sm:$0xff] }
  0x17   : > { %314 = vst.msk [vmem:[#allocation4 + $0x10] sm:$0xff] %vm311_vm0, %v1229_v32  ;;  %315 = vst.msk [vmem:[#allocation4 + $0x18] sm:$0xff] %vm311_vm0, %v1229_v32  ;;  %v1389_v52 = vld [vmem:[#allocation2 + $0x30] sm:$0xff]  ;;  %v1391_v53 = vld [vmem:[#allocation2 + $0x28] sm:$0xff] }
  0x18   : > { %1102 = vmatmul.mubr.msk.bf16.vlgmr.msra.gmra.mxu0 %vm311_vm0, %v1151_v3  ;;  %316 = vst.msk [vmem:[#allocation4 + $0x20] sm:$0xff] %vm311_vm0, %v1229_v32  ;;  %317 = vst.msk [vmem:[#allocation4 + $0x28] sm:$0xff] %vm311_vm0, %v1229_v32  ;;  %v1403_v59 = vld [vmem:[#allocation2 + $0x38] sm:$0xff] }
  0x19   : > { %1105 = vmatprep.mubr.msk.bf16.mxu0 %vm311_vm0, %v1152_v4  ;;  %318 = vst.msk [vmem:[#allocation4 + $0x30] sm:$0xff] %vm311_vm0, %v1229_v32  ;;  %319 = vst.msk [vmem:[#allocation4 + $0x38] sm:$0xff] %vm311_vm0, %v1229_v32 }
  0x20   : > { %1106 = vmatmul.mubr.msk.bf16.gmra.mxu0 %vm311_vm0, %v1153_v5 }
  0xd8   : > { %v1103_v7 = vpop.f32.mrf.mxu0 }
  0xd9   : > { %v1296_v8 = vmul.f32 0.25, %v1103_v7 }
  0xda   : > { %v405_v9 = vpop.f32.mrf.mxu0 }
  0xdb   : > { %v1298_v10 = vmul.f32 0.25, %v405_v9  ;;  %v458_v11 = vsel %vm311_vm0, %v1296_v8, -inf }
  0xdc   : > { %459 = vmax.xlane.f32.xlu1 %v458_v11  ;;  %v1104_v12 = vpop.f32.mrf.mxu0 }
  0xdd   : > { %v1302_v13 = vmul.f32 0.25, %v1104_v12  ;;  %v452_v14 = vsel %vm311_vm0, %v1298_v10, -inf }
  0xde   : > { %453 = vmax.xlane.f32.xlu0 %v452_v14  ;;  %v408_v15 = vpop.f32.mrf.mxu0 }
  0xdf   : > { %v1306_v16 = vmul.f32 0.25, %v408_v15  ;;  %v461_v17 = vsel %vm311_vm0, %v1302_v13, -inf }
  0xe0   : > { %462 = vmax.xlane.f32.xlu1 %v461_v17  ;;  %v1107_v18 = vpop.f32.mrf.mxu0 }
  0xe1   : > { %v455_v19 = vsel %vm311_vm0, %v1306_v16, -inf  ;;  %v1314_v23 = vmul.f32 0.25, %v1107_v18 }
  0xe2   : > { %456 = vmax.xlane.f32.xlu0 %v455_v19  ;;  %v421_v20 = vpop.f32.mrf.mxu0 }
  0xe3   : > { %v1312_v21 = vmul.f32 0.25, %v421_v20  ;;  %v470_v29 = vsel %vm311_vm0, %v1314_v23, -inf }
  0xe4   : > { %v1108_v22 = vpop.f32.mrf.mxu0 }
  0xe5   : > { %v464_v24 = vsel %vm311_vm0, %v1312_v21, -inf  ;;  %v1320_v28 = vmul.f32 0.25, %v1108_v22 }
  0xe6   : > { %465 = vmax.xlane.f32.xlu0 %v464_v24  ;;  %v424_v25 = vpop.f32.mrf.mxu0 }
  0xe7   : > { %v1318_v26 = vmul.f32 0.25, %v424_v25  ;;  %v473_v31 = vsel %vm311_vm0, %v1320_v28, -inf }
  0xe9   : > { %v467_v30 = vsel %vm311_vm0, %v1318_v26, -inf }
  0xea   : > { %471 = vmax.xlane.f32.xlu0 %v470_v29  ;;  %468 = vmax.xlane.f32.xlu1 %v467_v30 }
  0xee   : > { %474 = vmax.xlane.f32.xlu1 %v473_v31 }
 0x165   : > { %v460_v34 = vpop.xlane.xlu1 %459 }
 0x166   : > { %v1349_v36 = vmax.f32 %v1344_v33, %v460_v34 }
 0x167   : > { %v454_v37 = vpop.xlane.xlu0 %453 }
 0x168   : > { %v486_v39 = vsub.f32 %v1344_v33, %v1349_v36  ;;  %792 = vst.msk [vmem:[#allocation2 + $0x10] sm:$0xff] %vm294_vm1, %v1349_v36  ;;  %v1358_v40 = vmax.f32 %v1346_v35, %v454_v37  ;;  %520 = vperm.xlu1 %1148, %v1349_v36  }
 0x169   : > { %v463_v41 = vpop.xlane.xlu1 %462 }
 0x16a   : > { %v484_v43 = vsub.f32 %v1346_v35, %v1358_v40  ;;  %790 = vst.msk [vmem:[#allocation2] sm:$0xff] %vm294_vm1, %v1358_v40  ;;  %v1368_v44 = vmax.f32 %v1351_v38, %v463_v41  ;;  %510 = vperm.xlu0 %1147, %v1358_v40  }
 0x16b   : > { %v457_v45 = vpop.xlane.xlu0 %456 }
 0x16c   : > { %v487_v46 = vsub.f32 %v1351_v38, %v1368_v44  ;;  %793 = vst.msk [vmem:[#allocation2 + $0x18] sm:$0xff] %vm294_vm1, %v1368_v44  ;;  %v1376_v47 = vmax.f32 %v1361_v42, %v457_v45  ;;  %525 = vperm.xlu1 %1148, %v1368_v44  }
 0x16e   : > { %v485_v49 = vsub.f32 %v1361_v42, %v1376_v47  ;;  %791 = vst.msk [vmem:[#allocation2 + $0x8] sm:$0xff] %vm294_vm1, %v1376_v47  ;;  %v498_v42 = vmul.f32 1.442695, %v487_v46 }
 0x16f   : > { %v466_v50 = vpop.xlane.xlu0 %465 }
 0x170   : > { %v1386_v51 = vmax.f32 %v1379_v48, %v466_v50  ;;  %515 = vperm.xlu1 %1148, %v1376_v47  }
 0x172   : > { %v488_v54 = vsub.f32 %v1379_v48, %v1386_v51  ;;  %794 = vst.msk [vmem:[#allocation2 + $0x20] sm:$0xff] %vm294_vm1, %v1386_v51 }
 0x173   : > { %v472_v55 = vpop.xlane.xlu0 %471  ;;  %v469_v56 = vpop.xlane.xlu1 %468 }
 0x174   : > { %v1398_v57 = vmax.f32 %v1389_v52, %v472_v55  ;;  %v1401_v58 = vmax.f32 %v1391_v53, %v469_v56  ;;  %v500_v47 = vmul.f32 1.442695, %v488_v54 }
 0x176   : > { %v490_v60 = vsub.f32 %v1389_v52, %v1398_v57  ;;  %796 = vst.msk [vmem:[#allocation2 + $0x30] sm:$0xff] %vm294_vm1, %v1398_v57  ;;  %v489_v61 = vsub.f32 %v1391_v53, %v1401_v58  ;;  %795 = vst.msk [vmem:[#allocation2 + $0x28] sm:$0xff] %vm294_vm1, %v1401_v58  ;;  %540 = vperm.xlu1 %1148, %v1398_v57   ;;  %v572_v52 = vld [vmem:[#allocation3] sm:$0xff] }
 0x177   : > { %v475_v62 = vpop.xlane.xlu1 %474 }
 0x178   : > { %v1415_v63 = vmax.f32 %v1403_v59, %v475_v62  ;;  %v502_v35 = vmul.f32 1.442695, %v489_v61  ;;  %v504_v33 = vmul.f32 1.442695, %v490_v60  ;;  %v575_v60 = vld [vmem:[#allocation3 + $0x18] sm:$0xff] }
 0x17a   : > { %v491_v0 = vsub.f32 %v1403_v59, %v1415_v63  ;;  %797 = vst.msk [vmem:[#allocation2 + $0x38] sm:$0xff] %vm294_vm1, %v1415_v63  ;;  %530 = vperm.xlu1 %1148, %v1386_v51   ;;  %v574_v51 = vld [vmem:[#allocation3 + $0x10] sm:$0xff] }
 0x17c   : > { %v506_v36 = vmul.f32 1.442695, %v491_v0 }
 0x17e   : > { %535 = vperm.xlu1 %1148, %v1401_v58  }
 0x182   : > { %545 = vperm.xlu1 %1148, %v1415_v63   ;;  %v573_v63 = vld [vmem:[#allocation3 + $0x8] sm:$0xff] }
 0x1e3   : > { %v521_v2 = vpop.permute.xlu1 %520 }
 0x1e4   : > { %v550_v3 = vsub.f32 %v1296_v8, %v521_v2 }
 0x1e5   : > { %v511_v4 = vpop.permute.xlu0 %510 }
 0x1e6   : > { %v560_v5 = vmul.f32 1.442695, %v550_v3  ;;  %v548_v6 = vsub.f32 %v1298_v10, %v511_v4  ;;  %v494_v4 = vmul.f32 1.442695, %v485_v49 }
 0x1e7   : > { %v526_v7 = vpop.permute.xlu1 %525 }
 0x1e8   : > { %1155 = vpow2.f32 %v560_v5  ;;  %v556_v9 = vmul.f32 1.442695, %v548_v6  ;;  %v551_v11 = vsub.f32 %v1302_v13, %v526_v7  ;;  %v492_v7 = vmul.f32 1.442695, %v484_v43 }
 0x1ea   : > { %1157 = vpow2.f32 %v556_v9  ;;  %v562_v12 = vmul.f32 1.442695, %v551_v11  ;;  %v496_v9 = vmul.f32 1.442695, %v486_v39 }
 0x1eb   : > { %v516_v14 = vpop.permute.xlu1 %515 }
 0x1ec   : > { %1159 = vpow2.f32 %v562_v12  ;;  %v549_v15 = vsub.f32 %v1306_v16, %v516_v14 }
 0x1ee   : > { %v558_v17 = vmul.f32 1.442695, %v549_v15 }
 0x1f0   : > { %1161 = vpow2.f32 %v558_v17 }
 0x1f1   : > { %v541_v18 = vpop.permute.xlu1 %540 }
 0x1f2   : > { %v554_v8 = vsub.f32 %v1314_v23, %v541_v18 }
 0x1f4   : > { %v568_v13 = vmul.f32 1.442695, %v554_v8 }
 0x1f5   : > { %v1156_v19 = vpop.eup %1155  ;;  %v531_v20 = vpop.permute.xlu1 %530 }
 0x1f6   : > { %v552_v10 = vsub.f32 %v1312_v21, %v531_v20  ;;  %v594_v22 = vsel %vm311_vm0, %v1156_v19, 0.0 }
 0x1f7   : > { %v1158_v24 = vpop.eup %1157  ;;  %595 = vadd.xlane.f32.xlu0 %v594_v22 }
 0x1f8   : > { %v564_v25 = vmul.f32 1.442695, %v552_v10  ;;  %v588_v27 = vsel %vm311_vm0, %v1158_v24, 0.0 }
 0x1f9   : > { %v1160_v29 = vpop.eup %1159  ;;  %589 = vadd.xlane.f32.xlu1 %v588_v27  ;;  %v536_v16 = vpop.permute.xlu1 %535 }
 0x1fa   : > { %1163 = vpow2.f32 %v564_v25  ;;  %v553_v30 = vsub.f32 %v1318_v26, %v536_v16  ;;  %v597_v31 = vsel %vm311_vm0, %v1160_v29, 0.0  ;;  %v686_v45 = vpack.c.bf16 %v1160_v29, %v1156_v19  ;;  %v576_v19 = vld [vmem:[#allocation3 + $0x20] sm:$0xff] }
 0x1fb   : > { %1165 = vpow2.f32 %v568_v13  ;;  %v577_v13 = vld [vmem:[#allocation3 + $0x28] sm:$0xff] }
 0x1fc   : > { %v566_v23 = vmul.f32 1.442695, %v553_v30 }
 0x1fd   : > { %v1162_v32 = vpop.eup %1161  ;;  %598 = vadd.xlane.f32.xlu1 %v597_v31  ;;  %v546_v21 = vpop.permute.xlu1 %545  ;;  %v579_v31 = vld [vmem:[#allocation3 + $0x38] sm:$0xff] }
 0x1fe   : > { %1167 = vpow2.f32 %v566_v23  ;;  %v555_v34 = vsub.f32 %v1320_v28, %v546_v21  ;;  %v591_v37 = vsel %vm311_vm0, %v1162_v32, 0.0  ;;  %v685_v41 = vpack.c.bf16 %v1162_v32, %v1158_v24  ;;  %v578_v24 = vld [vmem:[#allocation3 + $0x30] sm:$0xff] }
 0x1ff   : > { %592 = vadd.xlane.f32.xlu0 %v591_v37 }
 0x200   : > { %v570_v50 = vmul.f32 1.442695, %v555_v34  ;;  %1111 = vmatprep.mubr.msk.bf16.mxu1 %vm311_vm0, %v685_v41 }
 0x201   : > { %1112 = vmatmul.mubr.msk.bf16.vlgmr.msra.gmra.mxu1 %vm311_vm0, %v686_v45 }
 0x202   : > { %1169 = vpow2.f32 %v570_v50 }
 0x203   : > { %1171 = vpow2.f32 %v494_v4 }
 0x204   : > { %1173 = vpow2.f32 %v492_v7 }
 0x205   : > { %1175 = vpow2.f32 %v496_v9  ;;  %v631_v9 = vld [vmem:[#allocation4 + $0x10] sm:$0xff] }
 0x206   : > { %1177 = vpow2.f32 %v498_v42 }
 0x207   : > { %v1164_v26 = vpop.eup %1163  ;;  %1179 = vpow2.f32 %v500_v47  ;;  %v629_v47 = vld [vmem:[#allocation4] sm:$0xff] }
 0x208   : > { %v600_v55 = vsel %vm311_vm0, %v1164_v26, 0.0  ;;  %v1166_v56 = vpop.eup %1165  ;;  %1181 = vpow2.f32 %v502_v35 }
 0x209   : > { %601 = vadd.xlane.f32.xlu0 %v600_v55  ;;  %v606_v1 = vsel %vm311_vm0, %v1166_v56, 0.0  ;;  %1183 = vpow2.f32 %v504_v33  ;;  %v632_v33 = vld [vmem:[#allocation4 + $0x18] sm:$0xff] }
 0x20a   : > { %1185 = vpow2.f32 %v506_v36 }
 0x20b   : > { %v1168_v62 = vpop.eup %1167 }
 0x20c   : > { %v603_v28 = vsel %vm311_vm0, %v1168_v62, 0.0  ;;  %v687_v2 = vpack.c.bf16 %v1168_v62, %v1164_v26 }
 0x20d   : > { %607 = vadd.xlane.f32.xlu0 %v606_v1  ;;  %604 = vadd.xlane.f32.xlu1 %v603_v28 }
 0x20e   : > { %1115 = vmatprep.mubr.msk.bf16.mxu1 %vm311_vm0, %v687_v2 }
 0x20f   : > { %v1170_v3 = vpop.eup %1169 }
 0x210   : > { %v609_v5 = vsel %vm311_vm0, %v1170_v3, 0.0  ;;  %v688_v6 = vpack.c.bf16 %v1170_v3, %v1166_v56  ;;  %v1172_v38 = vpop.eup %1171 }
 0x211   : > { %610 = vadd.xlane.f32.xlu1 %v609_v5  ;;  %v1174_v39 = vpop.eup %1173  ;;  %v581_v14 = vmul.f32 %v1172_v38, %v573_v63 }
 0x212   : > { %1116 = vmatmul.mubr.msk.bf16.gmra.mxu1 %vm311_vm0, %v688_v6  ;;  %v1176_v40 = vpop.eup %1175  ;;  %v580_v58 = vmul.f32 %v1174_v39, %v572_v52 }
 0x213   : > { %v1178_v43 = vpop.eup %1177  ;;  %v582_v53 = vmul.f32 %v1176_v40, %v574_v51 }
 0x214   : > { %v1180_v44 = vpop.eup %1179  ;;  %v583_v0 = vmul.f32 %v1178_v43, %v575_v60 }
 0x215   : > { %v1182_v46 = vpop.eup %1181  ;;  %v584_v10 = vmul.f32 %v1180_v44, %v576_v19 }
 0x216   : > { %v1184_v48 = vpop.eup %1183  ;;  %v585_v16 = vmul.f32 %v1182_v46, %v577_v13 }
 0x217   : > { %v1186_v49 = vpop.eup %1185  ;;  %v586_v29 = vmul.f32 %v1184_v48, %v578_v24 }
 0x218   : > { %v587_v37 = vmul.f32 %v1186_v49, %v579_v31 }
 0x222   : > { %644 = vperm.xlu1 %1148, %v1172_v38  }
 0x223   : > { %639 = vperm.xlu0 %1147, %v1174_v39  }
 0x226   : > { %649 = vperm.xlu1 %1148, %v1176_v40  }
 0x227   : > { %654 = vperm.xlu0 %1147, %v1178_v43   ;;  %v630_v43 = vld [vmem:[#allocation4 + $0x8] sm:$0xff] }
 0x22a   : > { %659 = vperm.xlu1 %1148, %v1180_v44  }
 0x22b   : > { %664 = vperm.xlu0 %1147, %v1182_v46  }
 0x22e   : > { %669 = vperm.xlu1 %1148, %v1184_v48  }
 0x22f   : > { %674 = vperm.xlu0 %1147, %v1186_v49  }
 0x280   : > { %v596_v54 = vpop.xlane.xlu0 %595 }
 0x281   : > { %v614_v57 = vadd.f32 %v596_v54, %v582_v53 }
 0x282   : > { %v590_v59 = vpop.xlane.xlu1 %589 }
 0x283   : > { %623 = vst.msk [vmem:[#allocation3 + $0x10] sm:$0xff] %vm294_vm1, %v614_v57  ;;  %v612_v61 = vadd.f32 %v590_v59, %v580_v58  ;;  %v635_v59 = vld [vmem:[#allocation4 + $0x30] sm:$0xff] }
 0x285   : > { %621 = vst.msk [vmem:[#allocation3] sm:$0xff] %vm294_vm1, %v612_v61  ;;  %v633_v61 = vld [vmem:[#allocation4 + $0x20] sm:$0xff] }
 0x286   : > { %v599_v11 = vpop.xlane.xlu1 %598 }
 0x287   : > { %v615_v12 = vadd.f32 %v599_v11, %v583_v0  ;;  %v636_v0 = vld [vmem:[#allocation4 + $0x38] sm:$0xff] }
 0x288   : > { %v593_v15 = vpop.xlane.xlu0 %592 }
 0x289   : > { %624 = vst.msk [vmem:[#allocation3 + $0x18] sm:$0xff] %vm294_vm1, %v615_v12  ;;  %v613_v17 = vadd.f32 %v593_v15, %v581_v14 }
 0x28a   : > { %v803_v18 = vld [vmem:[#allocation3 + $0x10] sm:$0xff] }
 0x28b   : > { %622 = vst.msk [vmem:[#allocation3 + $0x8] sm:$0xff] %vm294_vm1, %v613_v17  ;;  %1187 = vrcp.f32 %v803_v18  ;;  %v634_v17 = vld [vmem:[#allocation4 + $0x28] sm:$0xff] }
 0x28c   : > { %v801_v8 = vld [vmem:[#allocation3] sm:$0xff] }
 0x28d   : > { %1189 = vrcp.f32 %v801_v8 }
 0x290   : > { %v804_v20 = vld [vmem:[#allocation3 + $0x18] sm:$0xff] }
 0x291   : > { %1191 = vrcp.f32 %v804_v20 }
 0x292   : > { %v602_v22 = vpop.xlane.xlu0 %601  ;;  %v802_v25 = vld [vmem:[#allocation3 + $0x8] sm:$0xff] }
 0x293   : > { %v616_v27 = vadd.f32 %v602_v22, %v584_v10  ;;  %1193 = vrcp.f32 %v802_v25 }
 0x295   : > { %625 = vst.msk [vmem:[#allocation3 + $0x20] sm:$0xff] %vm294_vm1, %v616_v27 }
 0x296   : > { %v608_v30 = vpop.xlane.xlu0 %607  ;;  %v605_v23 = vpop.xlane.xlu1 %604 }
 0x297   : > { %v618_v32 = vadd.f32 %v608_v30, %v586_v29  ;;  %v617_v21 = vadd.f32 %v605_v23, %v585_v16 }
 0x298   : > { %v1188_v34 = vpop.eup %1187 }
 0x299   : > { %627 = vst.msk [vmem:[#allocation3 + $0x30] sm:$0xff] %vm294_vm1, %v618_v32  ;;  %626 = vst.msk [vmem:[#allocation3 + $0x28] sm:$0xff] %vm294_vm1, %v617_v21  ;;  %837 = vperm.xlu1 %1148, %v1188_v34  }
 0x29a   : > { %v611_v41 = vpop.xlane.xlu1 %610  ;;  %v1190_v50 = vpop.eup %1189 }
 0x29b   : > { %v619_v45 = vadd.f32 %v611_v41, %v587_v37 }
 0x29c   : > { %v805_v26 = vld [vmem:[#allocation3 + $0x20] sm:$0xff] }
 0x29d   : > { %628 = vst.msk [vmem:[#allocation3 + $0x38] sm:$0xff] %vm294_vm1, %v619_v45  ;;  %827 = vperm.xlu1 %1148, %v1190_v50   ;;  %1195 = vrcp.f32 %v805_v26 }
 0x29e   : > { %v1192_v55 = vpop.eup %1191  ;;  %v645_v6 = vpop.permute.xlu1 %644 }
 0x29f   : > { %842 = vperm.xlu0 %1147, %v1192_v55   ;;  %v640_v7 = vpop.permute.xlu0 %639  ;;  %v678_v51 = vmul.f32 %v645_v6, %v630_v43 }
 0x2a0   : > { %v807_v56 = vld [vmem:[#allocation3 + $0x30] sm:$0xff]  ;;  %v806_v62 = vld [vmem:[#allocation3 + $0x28] sm:$0xff]  ;;  %v1194_v1 = vpop.eup %1193  ;;  %v677_v39 = vmul.f32 %v640_v7, %v629_v47 }
 0x2a1   : > { %1197 = vrcp.f32 %v807_v56 }
 0x2a2   : > { %1199 = vrcp.f32 %v806_v62  ;;  %v650_v42 = vpop.permute.xlu1 %649 }
 0x2a3   : > { %832 = vperm.xlu0 %1147, %v1194_v1   ;;  %v679_v35 = vmul.f32 %v650_v42, %v631_v9  ;;  %v655_v36 = vpop.permute.xlu0 %654 }
 0x2a4   : > { %v808_v28 = vld [vmem:[#allocation3 + $0x38] sm:$0xff]  ;;  %v680_v46 = vmul.f32 %v655_v36, %v632_v33 }
 0x2a5   : > { %1201 = vrcp.f32 %v808_v28 }
 0x2a6   : > { %v660_v54 = vpop.permute.xlu1 %659 }
 0x2a7   : > { %v665_v58 = vpop.permute.xlu0 %664  ;;  %v681_v14 = vmul.f32 %v660_v54, %v633_v61 }
 0x2a8   : > { %v682_v10 = vmul.f32 %v665_v58, %v634_v17 }
 0x2aa   : > { %v1196_v2 = vpop.eup %1195  ;;  %v670_v60 = vpop.permute.xlu1 %669 }
 0x2ab   : > { %847 = vperm.xlu1 %1148, %v1196_v2   ;;  %v683_v63 = vmul.f32 %v670_v60, %v635_v59  ;;  %v675_v11 = vpop.permute.xlu0 %674 }
 0x2ac   : > { %v684_v8 = vmul.f32 %v675_v11, %v636_v0 }
 0x2ae   : > { %v1198_v3 = vpop.eup %1197 }
 0x2af   : > { %v1200_v4 = vpop.eup %1199  ;;  %857 = vperm.xlu1 %1148, %v1198_v3  }
 0x2b0   : > { %852 = vperm.xlu0 %1147, %v1200_v4  }
 0x2b2   : > { %v1202_v5 = vpop.eup %1201 }
 0x2b4   : > { %862 = vperm.xlu0 %1147, %v1202_v5  }
 0x2c1   : > { %v1113_v38 = vpop.f32.mrf.mxu1 }
 0x2c2   : > { %v776_v40 = vadd.f32 %v1113_v38, %v679_v35 }
 0x2c3   : > { %v743_v44 = vpop.f32.mrf.mxu1 }
 0x2c4   : > { %784 = vst.msk [vmem:[#allocation4 + $0x10] sm:$0xff] %vm311_vm0, %v776_v40  ;;  %v774_v48 = vadd.f32 %v743_v44, %v677_v39 }
 0x2c5   : > { %v1114_v49 = vpop.f32.mrf.mxu1 }
 0x2c6   : > { %782 = vst.msk [vmem:[#allocation4] sm:$0xff] %vm311_vm0, %v774_v48  ;;  %v777_v52 = vadd.f32 %v1114_v49, %v680_v46 }
 0x2c7   : > { %v746_v53 = vpop.f32.mrf.mxu1 }
 0x2c8   : > { %785 = vst.msk [vmem:[#allocation4 + $0x18] sm:$0xff] %vm311_vm0, %v777_v52  ;;  %v775_v57 = vadd.f32 %v746_v53, %v678_v51 }
 0x2ca   : > { %783 = vst.msk [vmem:[#allocation4 + $0x8] sm:$0xff] %vm311_vm0, %v775_v57 }
 0x2cb   : > { %v819_v25 = vld [vmem:[#allocation4 + $0x10] sm:$0xff] }
 0x2cd   : > { %v817_v30 = vld [vmem:[#allocation4] sm:$0xff] }
 0x2cf   : > { %v820_v32 = vld [vmem:[#allocation4 + $0x18] sm:$0xff] }
 0x2d1   : > { %v818_v50 = vld [vmem:[#allocation4 + $0x8] sm:$0xff] }
 0x2d2   : > { %v1117_v12 = vpop.f32.mrf.mxu1 }
 0x2d3   : > { %v780_v15 = vadd.f32 %v1117_v12, %v683_v63 }
 0x2d4   : > { %v759_v18 = vpop.f32.mrf.mxu1 }
 0x2d5   : > { %788 = vst.msk [vmem:[#allocation4 + $0x30] sm:$0xff] %vm311_vm0, %v780_v15  ;;  %v778_v19 = vadd.f32 %v759_v18, %v681_v14 }
 0x2d6   : > { %v1118_v20 = vpop.f32.mrf.mxu1 }
 0x2d7   : > { %786 = vst.msk [vmem:[#allocation4 + $0x20] sm:$0xff] %vm311_vm0, %v778_v19  ;;  %v781_v22 = vadd.f32 %v1118_v20, %v684_v8 }
 0x2d8   : > { %v762_v24 = vpop.f32.mrf.mxu1 }
 0x2d9   : > { %789 = vst.msk [vmem:[#allocation4 + $0x38] sm:$0xff] %vm311_vm0, %v781_v22  ;;  %v779_v13 = vadd.f32 %v762_v24, %v682_v10 }
 0x2db   : > { %787 = vst.msk [vmem:[#allocation4 + $0x28] sm:$0xff] %vm311_vm0, %v779_v13 }
 0x2dc   : > { %v823_v2 = vld [vmem:[#allocation4 + $0x30] sm:$0xff] }
 0x2de   : > { %v821_v56 = vld [vmem:[#allocation4 + $0x20] sm:$0xff] }
 0x2e0   : > { %v824_v47 = vld [vmem:[#allocation4 + $0x38] sm:$0xff] }
 0x2e2   : > { %v822_v4 = vld [vmem:[#allocation4 + $0x28] sm:$0xff] }
 0x314   : > { %v838_v27 = vpop.permute.xlu1 %837 }
 0x315   : > { %v867_v29 = vmul.f32 %v838_v27, %v819_v25 }
 0x317   : > { %v1083_v16 = vpack.c.bf16 %v867_v29, %v867_v29 }
 0x318   : > { %v828_v23 = vpop.permute.xlu1 %827 }
 0x319   : > { %908 = vst.msk [vmem:[%s1494_s29 + $0x8] sm:$0xf] %vm905_vm2, %v1083_v16  ;;  %v865_v31 = vmul.f32 %v828_v23, %v817_v30 }
 0x31a   : > { %v843_v21 = vpop.permute.xlu0 %842 }
 0x31b   : > { %v1081_v34 = vpack.c.bf16 %v865_v31, %v865_v31  ;;  %v868_v37 = vmul.f32 %v843_v21, %v820_v32 }
 0x31d   : > { %906 = vst.msk [vmem:[%s1494_s29] sm:$0xf] %vm905_vm2, %v1081_v34  ;;  %v1084_v41 = vpack.c.bf16 %v868_v37, %v868_v37 }
 0x31e   : > { %v833_v45 = vpop.permute.xlu0 %832 }
 0x31f   : > { %909 = vst.msk [vmem:[%s1494_s29 + $0xc] sm:$0xf] %vm905_vm2, %v1084_v41  ;;  %v866_v26 = vmul.f32 %v833_v45, %v818_v50 }
 0x321   : > { %v1082_v55 = vpack.c.bf16 %v866_v26, %v866_v26 }
 0x323   : > { %907 = vst.msk [vmem:[%s1494_s29 + $0x4] sm:$0xf] %vm905_vm2, %v1082_v55 }
 0x326   : > { %v848_v62 = vpop.permute.xlu1 %847 }
 0x327   : > { %v869_v1 = vmul.f32 %v848_v62, %v821_v56 }
 0x329   : > { %v1085_v28 = vpack.c.bf16 %v869_v1, %v869_v1 }
 0x32a   : > { %v858_v3 = vpop.permute.xlu1 %857 }
 0x32b   : > { %910 = vst.msk [vmem:[%s1494_s29 + $0x10] sm:$0xf] %vm905_vm2, %v1085_v28  ;;  %v853_v5 = vpop.permute.xlu0 %852  ;;  %v871_v6 = vmul.f32 %v858_v3, %v823_v2 }
 0x32c   : > { %v870_v7 = vmul.f32 %v853_v5, %v822_v4 }
 0x32d   : > { %v1087_v9 = vpack.c.bf16 %v871_v6, %v871_v6 }
 0x32e   : > { %v1086_v42 = vpack.c.bf16 %v870_v7, %v870_v7 }
 0x32f   : > { %912 = vst.msk [vmem:[%s1494_s29 + $0x18] sm:$0xf] %vm905_vm2, %v1087_v9  ;;  %v863_v35 = vpop.permute.xlu0 %862 }
 0x330   : > { %911 = vst.msk [vmem:[%s1494_s29 + $0x14] sm:$0xf] %vm905_vm2, %v1086_v42  ;;  %v872_v33 = vmul.f32 %v863_v35, %v824_v47 }
 0x332   : > { %v1088_v36 = vpack.c.bf16 %v872_v33, %v872_v33 }
 0x334   : > { %913 = vst.msk [vmem:[%s1494_s29 + $0x1c] sm:$0xf] %vm905_vm2, %v1088_v36 }
 0x335 PF: > { %s13_s14 = sadd.s32 1, %s1225_s14   ;;  %s1525_s12 = smov %s1221_s13 }
 0x336   : > { %p10_p5 = scmp.ge.s32.totalorder %s13_s14, 6   ;;  %s1526_s13 = smov %s1528_s15 }
 0x338   :  { %12 = sbr.rel (!%p10_p5) target bundleno = 2 (0x2), region = 76 }

</bundles_post_ra>
